<compile_context>
chip_gen: v7x
topology: tpu7x:2x2x1
jax: 0.10.0
libtpu: 0.0.40
codegen_flags: <defaults>
</compile_context>

<pallas_src>
from functools import partial

import jax
import jax.numpy as jnp
from jax.experimental import pallas as pl
from jax.experimental.pallas import tpu as pltpu

MLP_ALIGNMENT = 16

N_INPUT_DIMS = 3
N_OUTPUT_DIMS = 1
N_NEURONS = 64
N_HIDDEN_LAYERS = 3
N_OUT_PADDED = (N_OUTPUT_DIMS + MLP_ALIGNMENT - 1) // MLP_ALIGNMENT * MLP_ALIGNMENT  # 16


def _cdiv(a, b):
    return (a + b - 1) // b


def _round_up(n, m):
    return _cdiv(n, m) * m


def _default_pack_factor():
    """K copies of every weight go on the MXU diagonal: K=4 fills the 256x256
    array on v6e/v7x, K=2 matches v5e's (and older) 128x128 tiles."""
    try:
        kind = jax.devices()[0].device_kind.lower()
    except Exception:
        return 4
    for tag in ("v2", "v3", "v4", "v5"):
        if tag in kind:
            return 2
    return 4


def _choose_tiling(batch, k, max_step_batch=4096):
    """Grid always >= 2 and even (both v7x TensorCores, no 1-step tail imbalance);
    per-step batch is a multiple of 128*k so the stacked lanes stay dense; per-step
    batch capped at 4096 so f32 intermediates stay small in VMEM."""
    gran = 128 * k
    grid = max(2, _cdiv(max(batch, 1), max_step_batch))
    if grid % 2:
        grid += 1
    step_batch = _round_up(_cdiv(max(batch, 1), grid), gran)
    return grid, step_batch, grid * step_batch


def _block_diag(w, k):
    """block_diag(w, ..., w) with k copies, i.e. kron(I_k, w)."""
    return jnp.kron(jnp.eye(k, dtype=jnp.float32), w.astype(jnp.float32))


def _mlp_kernel(x_ref, w1_ref, w2_ref, w3_ref, wl_ref, o_ref):
    # x_ref : (3*K, TBs)   stacked feature-major tile (lanes = batch, K chunks on sublanes)
    # w1    : (64*K, 3*K)  block-diag of PyTorch-layout (64, 3)
    # w2,w3 : (64*K, 64*K) block-diag of (64, 64)
    # wl    : (64*K, 1)    last-layer row of `last`, tiled per chunk (f32)
    # o_ref : (K, TBs)     one output row per chunk
    cdt = w1_ref.dtype
    k = o_ref.shape[0]

    h = jnp.dot(w1_ref[...], x_ref[...], preferred_element_type=jnp.float32)
    h = jnp.maximum(h, 0.0).astype(cdt)                       # ReLU
    h = jnp.dot(w2_ref[...], h, preferred_element_type=jnp.float32)
    h = jnp.maximum(h, 0.0).astype(cdt)
    h = jnp.dot(w3_ref[...], h, preferred_element_type=jnp.float32)
    h = jnp.maximum(h, 0.0)                                   # keep f32 for the finale

    # Last layer off the MXU: VPU elementwise scale by wl, XLU sublane-reduce
    # each 64-row chunk down to its single output row.
    hw = h * wl_ref[...]                                      # (64*K, TBs) * (64*K, 1)
    parts = [jnp.sum(hw[c * N_NEURONS:(c + 1) * N_NEURONS, :], axis=0, keepdims=True)
             for c in range(k)]
    o_ref[...] = jnp.concatenate(parts, axis=0).astype(o_ref.dtype)


@partial(jax.jit, static_argnames=("pack_factor", "max_step_batch", "compute_dtype"))
def mlp_native_forward(x, w1, w2, w3, wl, *, pack_factor=None,
                       max_step_batch=4096, compute_dtype=jnp.bfloat16):
    """x: (B, 3) float32. Weights in PyTorch (out, in) layout:
       w1 (64, 3), w2/w3 (64, 64), wl (16, 64). Returns (B, 1) float32."""
    B, d_in = x.shape
    assert d_in == N_INPUT_DIMS
    assert w1.shape == (N_NEURONS, N_INPUT_DIMS)
    assert w2.shape == (N_NEURONS, N_NEURONS) and w3.shape == (N_NEURONS, N_NEURONS)
    assert wl.shape[1] == N_NEURONS and wl.shape[0] >= N_OUTPUT_DIMS
    assert N_OUTPUT_DIMS == 1  # VPU finale is specialized to a single output row

    k = pack_factor if pack_factor is not None else _default_pack_factor()
    grid, step_batch, b_pad = _choose_tiling(B, k, max_step_batch)
    tbs = step_batch // k          # stacked columns per grid step (multiple of 128)
    cols = b_pad // k              # total stacked columns
    cdt = compute_dtype

    # Stack K contiguous batch sub-chunks along sublanes; batch stays on lanes so
    # DMAs and stores remain lane-dense. Zero padding stays zero through the net
    # (bias=False, ReLU(0)=0) and is sliced off below anyway. All of pad + cast +
    # transpose + reshape fuses into one XLA op under this jit.
    x_pad = jnp.pad(x, ((0, b_pad - B), (0, 0))).astype(cdt)               # (b_pad, 3)
    x_stk = jnp.transpose(x_pad.reshape(k, cols, N_INPUT_DIMS), (0, 2, 1))
    x_stk = x_stk.reshape(k * N_INPUT_DIMS, cols)                          # (3K, cols)

    # Block-diagonal packed weights: chunk c of the input maps to rows
    # [c*64, (c+1)*64) of every hidden activation.
    w1_p = _block_diag(w1, k).astype(cdt)                                  # (64K, 3K)
    w2_p = _block_diag(w2, k).astype(cdt)                                  # (64K, 64K)
    w3_p = _block_diag(w3, k).astype(cdt)                                  # (64K, 64K)
    # Only row 0 of `last` is ever used (rest sliced off by the module); keep it
    # in f32 as a per-chunk column for the VPU/XLU finale.
    wl_col = jnp.tile(wl[:N_OUTPUT_DIMS].astype(jnp.float32).T, (k, 1))    # (64K, 1)

    itemsize = jnp.dtype(cdt).itemsize
    flops = 2 * b_pad * (N_INPUT_DIMS * N_NEURONS
                         + (N_HIDDEN_LAYERS - 1) * N_NEURONS * N_NEURONS
                         + N_NEURONS * N_OUTPUT_DIMS)
    bytes_accessed = (x_stk.size * itemsize
                      + (w1_p.size + w2_p.size + w3_p.size) * itemsize
                      + wl_col.size * 4
                      + b_pad * N_OUTPUT_DIMS * 4)

    out_stk = pl.pallas_call(
        _mlp_kernel,
        out_shape=jax.ShapeDtypeStruct((k, cols), jnp.float32),
        grid_spec=pltpu.PrefetchScalarGridSpec(
            num_scalar_prefetch=0,
            grid=(grid,),
            in_specs=[
                pl.BlockSpec((k * N_INPUT_DIMS, tbs), lambda i: (0, i)),
                # Weight blocks: constant (0,0) index -> Pallas keeps them resident
                # in VMEM across grid steps (no per-step re-DMA).
                pl.BlockSpec((k * N_NEURONS, k * N_INPUT_DIMS), lambda i: (0, 0)),
                pl.BlockSpec((k * N_NEURONS, k * N_NEURONS), lambda i: (0, 0)),
                pl.BlockSpec((k * N_NEURONS, k * N_NEURONS), lambda i: (0, 0)),
                pl.BlockSpec((k * N_NEURONS, 1), lambda i: (0, 0)),
            ],
            out_specs=pl.BlockSpec((k, tbs), lambda i: (0, i)),
        ),
        compiler_params=pltpu.CompilerParams(
            dimension_semantics=("parallel",),
            vmem_limit_bytes=16 * 1024 * 1024,   # actual working set is a few MiB
        ),
        cost_estimate=pl.CostEstimate(flops=flops, transcendentals=0,
                                      bytes_accessed=bytes_accessed),
    )(x_stk, w1_p, w2_p, w3_p, wl_col)

    # Un-stack: row-major flatten of (K, b_pad/K) restores batch order; drop padding.
    return out_stk.reshape(b_pad)[:B, None]


def _init_params(key):
    """Deterministic Kaiming-uniform-style init, PyTorch (out, in) weight layout."""
    def linear_w(k_, fan_out, fan_in):
        bound = 1.0 / jnp.sqrt(jnp.float32(fan_in))
        return jax.random.uniform(k_, (fan_out, fan_in), jnp.float32, -bound, bound)

    k1, k2, k3, k4 = jax.random.split(key, 4)
    w1 = linear_w(k1, N_NEURONS, N_INPUT_DIMS)      # first
    w2 = linear_w(k2, N_NEURONS, N_NEURONS)         # hidden[0]
    w3 = linear_w(k3, N_NEURONS, N_NEURONS)         # hidden[1]
    wl = linear_w(k4, N_OUT_PADDED, N_NEURONS)      # last (padded to 16 outputs)
    return w1, w2, w3, wl


def _reference_forward(x, w1, w2, w3, wl):
    mm = partial(jnp.dot, precision=jax.lax.Precision.HIGHEST)
    h = jnp.maximum(mm(x, w1.T), 0.0)
    h = jnp.maximum(mm(h, w2.T), 0.0)
    h = jnp.maximum(mm(h, w3.T), 0.0)
    return mm(h, wl.T)[..., :N_OUTPUT_DIMS]


if __name__ == "__main__":
    key = jax.random.PRNGKey(0)
    kx, kp = jax.random.split(key)

    B = 500  # deliberately not tile-aligned: wrapper pads/unpads the batch itself
    x = jax.random.normal(kx, (B, N_INPUT_DIMS), jnp.float32)
    w1, w2, w3, wl = _init_params(kp)

    ref = _reference_forward(x, w1, w2, w3, wl)

    # float32 operand path: tight check against the JAX reference.
    out_f32 = jax.block_until_ready(
        mlp_native_forward(x, w1, w2, w3, wl, compute_dtype=jnp.float32))
    assert out_f32.shape == (B, N_OUTPUT_DIMS)
    assert jnp.allclose(out_f32, ref, atol=1e-4, rtol=1e-4), "f32 mismatch vs reference"

    # default bf16-operand path (what v6e/v7x want): looser tolerance for the
    # bf16 matmul chain (f32 accumulation inside the MXU, f32 finale on the VPU).
    out_bf16 = jax.block_until_ready(mlp_native_forward(x, w1, w2, w3, wl))
    assert out_bf16.shape == (B, N_OUTPUT_DIMS)
    assert jnp.allclose(out_bf16, ref, atol=3e-2, rtol=5e-2), "bf16 mismatch vs reference"

    print("KERNEL_OK")
</pallas_src>

<mosaic_0001>
module attributes {stable_mosaic.version = 11 : i64} {
  func.func @_mlp_kernel(%arg0: i32, %arg1: memref<12x128xf32, #tpu.memory_space<vmem>>, %arg2: memref<256x12xf32, #tpu.memory_space<vmem>>, %arg3: memref<256x256xf32, #tpu.memory_space<vmem>>, %arg4: memref<256x256xf32, #tpu.memory_space<vmem>>, %arg5: memref<256x1xf32, #tpu.memory_space<vmem>>, %arg6: memref<4x128xf32, #tpu.memory_space<vmem>>) attributes {dimension_semantics = [#tpu.dimension_semantics<parallel>], iteration_bounds = array<i64: 2>, scalar_prefetch = 0 : i64, scratch_operands = 0 : i64, tpu.core_type = #tpu.core_type<tc>, window_params = [{transform_indices = @transform_0, window_bounds = array<i64: 12, 128>}, {pipeline_mode = #tpu.pipeline_mode<synchronous>, transform_indices = @transform_1, window_bounds = array<i64: 256, 12>}, {pipeline_mode = #tpu.pipeline_mode<synchronous>, transform_indices = @transform_2, window_bounds = array<i64: 256, 256>}, {pipeline_mode = #tpu.pipeline_mode<synchronous>, transform_indices = @transform_3, window_bounds = array<i64: 256, 256>}, {pipeline_mode = #tpu.pipeline_mode<synchronous>, transform_indices = @transform_4, window_bounds = array<i64: 256, 1>}, {transform_indices = @transform_5, window_bounds = array<i64: 4, 128>}]} {
    %c0 = arith.constant 0 : index
    %c0_0 = arith.constant 0 : index
    %0 = vector.load %arg2[%c0, %c0_0] : memref<256x12xf32, #tpu.memory_space<vmem>>, vector<256x12xf32>
    %c0_1 = arith.constant 0 : index
    %c0_2 = arith.constant 0 : index
    %1 = vector.load %arg1[%c0_1, %c0_2] : memref<12x128xf32, #tpu.memory_space<vmem>>, vector<12x128xf32>
    %cst = arith.constant dense<0.000000e+00> : vector<256x128xf32>
    %2 = tpu.matmul %0, %1, %cst {dimension_numbers = #tpu.dot_dimension_numbers<[1], [0], [0], [1], [0, 0, 1, 1], [], []>} : vector<256x12xf32>, vector<12x128xf32>, vector<256x128xf32> -> vector<256x128xf32>
    %cst_3 = arith.constant 0.000000e+00 : f32
    %3 = vector.broadcast %cst_3 : f32 to vector<256x128xf32>
    %4 = arith.maximumf %2, %3 : vector<256x128xf32>
    %c0_4 = arith.constant 0 : index
    %c0_5 = arith.constant 0 : index
    %5 = vector.load %arg3[%c0_4, %c0_5] : memref<256x256xf32, #tpu.memory_space<vmem>>, vector<256x256xf32>
    %cst_6 = arith.constant dense<0.000000e+00> : vector<256x128xf32>
    %6 = tpu.matmul %5, %4, %cst_6 {dimension_numbers = #tpu.dot_dimension_numbers<[1], [0], [0], [1], [0, 0, 1, 1], [], []>} : vector<256x256xf32>, vector<256x128xf32>, vector<256x128xf32> -> vector<256x128xf32>
    %cst_7 = arith.constant 0.000000e+00 : f32
    %7 = vector.broadcast %cst_7 : f32 to vector<256x128xf32>
    %8 = arith.maximumf %6, %7 : vector<256x128xf32>
    %c0_8 = arith.constant 0 : index
    %c0_9 = arith.constant 0 : index
    %9 = vector.load %arg4[%c0_8, %c0_9] : memref<256x256xf32, #tpu.memory_space<vmem>>, vector<256x256xf32>
    %cst_10 = arith.constant dense<0.000000e+00> : vector<256x128xf32>
    %10 = tpu.matmul %9, %8, %cst_10 {dimension_numbers = #tpu.dot_dimension_numbers<[1], [0], [0], [1], [0, 0, 1, 1], [], []>} : vector<256x256xf32>, vector<256x128xf32>, vector<256x128xf32> -> vector<256x128xf32>
    %cst_11 = arith.constant 0.000000e+00 : f32
    %11 = vector.broadcast %cst_11 : f32 to vector<256x128xf32>
    %12 = arith.maximumf %10, %11 : vector<256x128xf32>
    %c0_12 = arith.constant 0 : index
    %c0_13 = arith.constant 0 : index
    %13 = vector.load %arg5[%c0_12, %c0_13] : memref<256x1xf32, #tpu.memory_space<vmem>>, vector<256x1xf32>
    %14 = vector.broadcast %13 : vector<256x1xf32> to vector<256x128xf32>
    %15 = arith.mulf %12, %14 : vector<256x128xf32>
    %16 = vector.extract_strided_slice %15 {offsets = [0, 0], sizes = [64, 128], strides = [1, 1]} : vector<256x128xf32> to vector<64x128xf32>
    %cst_14 = arith.constant dense<0.000000e+00> : vector<128xf32>
    %17 = vector.multi_reduction <add>, %16, %cst_14 [0] : vector<64x128xf32> to vector<128xf32>
    %18 = vector.shape_cast %17 : vector<128xf32> to vector<1x128xf32>
    %19 = vector.extract_strided_slice %15 {offsets = [64, 0], sizes = [64, 128], strides = [1, 1]} : vector<256x128xf32> to vector<64x128xf32>
    %cst_15 = arith.constant dense<0.000000e+00> : vector<128xf32>
    %20 = vector.multi_reduction <add>, %19, %cst_15 [0] : vector<64x128xf32> to vector<128xf32>
    %21 = vector.shape_cast %20 : vector<128xf32> to vector<1x128xf32>
    %22 = vector.extract_strided_slice %15 {offsets = [128, 0], sizes = [64, 128], strides = [1, 1]} : vector<256x128xf32> to vector<64x128xf32>
    %cst_16 = arith.constant dense<0.000000e+00> : vector<128xf32>
    %23 = vector.multi_reduction <add>, %22, %cst_16 [0] : vector<64x128xf32> to vector<128xf32>
    %24 = vector.shape_cast %23 : vector<128xf32> to vector<1x128xf32>
    %25 = vector.extract_strided_slice %15 {offsets = [192, 0], sizes = [64, 128], strides = [1, 1]} : vector<256x128xf32> to vector<64x128xf32>
    %cst_17 = arith.constant dense<0.000000e+00> : vector<128xf32>
    %26 = vector.multi_reduction <add>, %25, %cst_17 [0] : vector<64x128xf32> to vector<128xf32>
    %27 = vector.shape_cast %26 : vector<128xf32> to vector<1x128xf32>
    %28 = tpu.concatenate %18, %21, %24, %27 in 0 : vector<1x128xf32>, vector<1x128xf32>, vector<1x128xf32>, vector<1x128xf32> -> vector<4x128xf32>
    %c0_18 = arith.constant 0 : index
    %c0_19 = arith.constant 0 : index
    %29 = vector.load %arg6[%c0_18, %c0_19] : memref<4x128xf32, #tpu.memory_space<vmem>>, vector<4x128xf32>
    tpu.vector_store %arg6[%c0_18, %c0_19], %28 {strides = array<i32>} : memref<4x128xf32, #tpu.memory_space<vmem>>, vector<4x128xf32>,
    return
  }
  func.func @transform_0(%arg0: i32) -> (i32, i32) {
    %c0_i32 = arith.constant 0 : i32
    %c0_i32_0 = arith.constant 0 : i32
    return %c0_i32, %arg0 : i32, i32
  }
  func.func @transform_1(%arg0: i32) -> (i32, i32) {
    %c0_i32 = arith.constant 0 : i32
    %c0_i32_0 = arith.constant 0 : i32
    %c0_i32_1 = arith.constant 0 : i32
    return %c0_i32, %c0_i32_0 : i32, i32
  }
  func.func @transform_2(%arg0: i32) -> (i32, i32) {
    %c0_i32 = arith.constant 0 : i32
    %c0_i32_0 = arith.constant 0 : i32
    %c0_i32_1 = arith.constant 0 : i32
    return %c0_i32, %c0_i32_0 : i32, i32
  }
  func.func @transform_3(%arg0: i32) -> (i32, i32) {
    %c0_i32 = arith.constant 0 : i32
    %c0_i32_0 = arith.constant 0 : i32
    %c0_i32_1 = arith.constant 0 : i32
    return %c0_i32, %c0_i32_0 : i32, i32
  }
  func.func @transform_4(%arg0: i32) -> (i32, i32) {
    %c0_i32 = arith.constant 0 : i32
    %c0_i32_0 = arith.constant 0 : i32
    %c0_i32_1 = arith.constant 0 : i32
    return %c0_i32, %c0_i32_0 : i32, i32
  }
  func.func @transform_5(%arg0: i32) -> (i32, i32) {
    %c0_i32 = arith.constant 0 : i32
    %c0_i32_0 = arith.constant 0 : i32
    return %c0_i32, %arg0 : i32, i32
  }
}

</mosaic_0001>

<bundles_post_ra>
// kernel: mlp_native_forward.1
= control target key start
LH: loop header
LB: loop body
LE: loop exit
PB: predicated region body
PF: predicated region fallthrough
CT: control target
= control target key end

     0   :  { %s1955_s18 = smov 0   ;;  %s1957_s19 = smov 0   ;;  %s2685_s0 = inlined_call_operand.vmem [shape: f32[12,256], index: 0, kind: input, shape index: {}]   ;;  %s2686_s1 = inlined_call_operand.vmem [shape: f32[256,12], index: 1, kind: input, shape index: {}]   ;;  %s2687_s2 = inlined_call_operand.vmem [shape: f32[256,256], index: 2, kind: input, shape index: {}]   ;;  %s2688_s3 = inlined_call_operand.vmem [shape: f32[256,256], index: 3, kind: input, shape index: {}]   ;;  %s2689_s4 = inlined_call_operand.vmem [shape: f32[256,1], index: 4, kind: input, shape index: {}]   ;;  %s2690_s5 = inlined_call_operand.vmem [shape: f32[4,256], index: 5, kind: output, shape index: {}]  }
   0x1   :  { %s1959_s20 = smov 0  }
   0x2 LB: > { %s1637_s21 = sadd.s32 4294967295, %s1920_s20   ;;  %s1972_s22 = sadd.s32 1, %s1920_s20   ;;  %s1920_s20 = sphi %s1959_s20, %s2693_s20   ;;  %s1916_s19 = sphi %s1957_s19, %s2692_s19   ;;  %s1912_s18 = sphi %s1955_s18, %s2691_s18  }
   0x3   : > { %s19_s23 = ssub.s32 %s1920_s20, %s1972_s22  ;;  %s22_s24 = sadd.s32 1, %s1916_s19 }
   0x4   : > { %p20_p0 = scmp.eq.s32.totalorder %s19_s23, 0  ;;  %p29_p1 = scmp.ne.s32.totalorder %s1916_s19, %s1912_s18 }
   0x5   : > { %p30_p2 = scmp.eq.s32.totalorder %s1920_s20, 0  ;;  %p1640_p4 = scmp.ge.s32.totalorder %s1920_s20, 2 }
   0x6   : > { %s1981_s25 = scalar_select %p20_p0, %s1916_s19, %s22_s24  }
   0x7   : > { %p31_p3 = por %p30_p2, %p29_p1  ;;  %177 = sbr.rel (%p1640_p4) target bundleno = 21 (0x15), region = 32 }
   0xe   : > { %180 = sbr.rel (!%p31_p3) target bundleno = 21 (0x15), region = 36  ;;  %s182_s26 = sand.u32 (%p31_p3), 1, %s1916_s19  }
   0xf   : > { %s1642_s27 = sshll.u32 (%p31_p3), %s1920_s20, 3  ;;  %s1641_s28 = sshll.u32 (%p31_p3), %s182_s26, 4 }
  0x10   : > { %s186_s6 = scalar_lea.vmem (%p31_p3), %s2685_s0, %s1642_s27  ;;  %s184_s7 = scalar_lea.vmem (%p31_p3), [#allocation2], %s1641_s28 }
  0x11   : > { %v216_v0 = vld [vmem:[%s186_s6] sm:$0xff] (%p31_p3)  ;;  %v218_v1 = vld [vmem:[%s186_s6 + $0x10] sm:$0xff] (%p31_p3) }
  0x12   : > { %217 = vst [vmem:[%s184_s7] sm:$0xff] (%p31_p3), %v216_v0  ;;  %219 = vst [vmem:[%s184_s7 + $0x8] sm:$0xff] (%p31_p3), %v218_v1 }
  0x15 PF: > { %p1643_p5 = scmp.ge.s32.totalorder %s1920_s20, 1  ;;  %p224_p6 = scmp.lt.s32.totalorder %s1920_s20, 3 }
  0x17   : > { %p225_p7 = pnand %p1643_p5, %p224_p6 }
  0x18   : > { %s231_s8 = sand.u32 (!%p225_p7), 1, %s1912_s18   ;;  %vm392_vm0 = vcmask (!%p225_p7), 1043456   ;;  %v261_v2 = vld [vmem:[%s2686_s1] sm:$0xff] (!%p225_p7)  ;;  %vm295_vm1 = vcmask (!%p225_p7), 97280   ;;  %vm1922_vm2 = vmmov (!%p225_p7), 1   ;;  %v262_v6 = vld [vmem:[%s2686_s1 + $0x8] sm:$0xff] (!%p225_p7) }
  0x19   : > { %228 = sbr.rel (%p225_p7) target bundleno = 1013 (0x3f5), region = 74  ;;  %s1644_s11 = sshll.u32 (!%p225_p7), %s231_s8, 4  ;;  %1719 = vmatprep.mubr.msk.f32.mxu0 (!%p225_p7), %vm295_vm1, %v261_v2  ;;  %vm1768_vm3 = vmpackc.low (!%p225_p7), %vm392_vm0, %vm1922_vm2  ;;  %v263_v7 = vld [vmem:[%s2686_s1 + $0x10] sm:$0xff] (!%p225_p7)  ;;  %v264_v8 = vld [vmem:[%s2686_s1 + $0x18] sm:$0xff] (!%p225_p7)  ;;  %v1923_v37 = vmov (!%p225_p7), 0.0|0.0   ;;  %vm1571_vm4 = vcmask (!%p225_p7), 1040384  }
  0x1a   : > { %s233_s12 = scalar_lea.vmem (!%p225_p7), [#allocation2], %s1644_s11  ;;  %v265_v9 = vld [vmem:[%s2686_s1 + $0x20] sm:$0xff] (!%p225_p7)  ;;  %v266_v10 = vld [vmem:[%s2686_s1 + $0x28] sm:$0xff] (!%p225_p7)  ;;  %v267_v11 = vld [vmem:[%s2686_s1 + $0x30] sm:$0xff] (!%p225_p7)  ;;  %1773 = vmatprep.subr.bf16.mxu1 (!%p225_p7), %v1923_v37  ;;  %vm1573_vm5 = vcmask (!%p225_p7), 1041408   ;;  %p257_p8 = scmp.lt.s32.totalorder (!%p225_p7), %s1637_s21, 1 }
  0x1b   : > { %v293_v3 = vld [vmem:[%s233_s12] sm:$0xff] (!%p225_p7)  ;;  %v294_v4 = vld [vmem:[%s233_s12 + $0x8] sm:$0xf] (!%p225_p7)  ;;  %vm1575_vm6 = vcmask (!%p225_p7), 1042432  }
  0x1c   : > { %v1767_v5 = vpack.c.bf16 (!%p225_p7), %v294_v4, %v293_v3  ;;  %v268_v12 = vld [vmem:[%s2686_s1 + $0x38] sm:$0xff] (!%p225_p7)  ;;  %v269_v13 = vld [vmem:[%s2686_s1 + $0x40] sm:$0xff] (!%p225_p7)  ;;  %v270_v14 = vld [vmem:[%s2686_s1 + $0x48] sm:$0xff] (!%p225_p7) }
  0x1d   : > { %v271_v15 = vld [vmem:[%s2686_s1 + $0x50] sm:$0xff] (!%p225_p7)  ;;  %v272_v16 = vld [vmem:[%s2686_s1 + $0x58] sm:$0xff] (!%p225_p7)  ;;  %v273_v17 = vld [vmem:[%s2686_s1 + $0x60] sm:$0xff] (!%p225_p7) }
  0x1e   : > { %1769 = vmatprep.subr.msk.bf16.mxu0 (!%p225_p7), %vm1768_vm3, %v1767_v5  ;;  %v274_v18 = vld [vmem:[%s2686_s1 + $0x68] sm:$0xff] (!%p225_p7)  ;;  %v275_v19 = vld [vmem:[%s2686_s1 + $0x70] sm:$0xff] (!%p225_p7)  ;;  %v276_v20 = vld [vmem:[%s2686_s1 + $0x78] sm:$0xff] (!%p225_p7) }
  0x1f   : > { %1772 = vmatpush3.bf16.msk.msra.mxu0 (!%p225_p7), %vm1768_vm3, %v1767_v5  ;;  %v277_v21 = vld [vmem:[%s2686_s1 + $0x80] sm:$0xff] (!%p225_p7)  ;;  %v278_v22 = vld [vmem:[%s2686_s1 + $0x88] sm:$0xff] (!%p225_p7)  ;;  %v279_v23 = vld [vmem:[%s2686_s1 + $0x90] sm:$0xff] (!%p225_p7) }
  0x20   : > { %v280_v24 = vld [vmem:[%s2686_s1 + $0x98] sm:$0xff]  ;;  %v281_v25 = vld [vmem:[%s2686_s1 + $0xa0] sm:$0xff]  ;;  %v282_v26 = vld [vmem:[%s2686_s1 + $0xa8] sm:$0xff]  ;;  %1821 = vmatprep.subr.bf16.mxu0 %v1923_v37  ;;  %s2695_s21 = smov (!%p257_p8, %s1637_s21), 1 }
  0x21   : > { %v283_v27 = vld [vmem:[%s2686_s1 + $0xb0] sm:$0xff]  ;;  %v284_v28 = vld [vmem:[%s2686_s1 + $0xb8] sm:$0xff]  ;;  %v285_v29 = vld [vmem:[%s2686_s1 + $0xc0] sm:$0xff]  ;;  %s1645_s15 = sshll.u32 %s2695_s21, 2 }
  0x22   : > { %1720 = vmatmul.mubr.msk.f32.vlgmr.msra.gmra.mrb[0].mxu0 %vm295_vm1, %v262_v6  ;;  %v286_v30 = vld [vmem:[%s2686_s1 + $0xc8] sm:$0xff]  ;;  %v287_v31 = vld [vmem:[%s2686_s1 + $0xd0] sm:$0xff]  ;;  %v288_v32 = vld [vmem:[%s2686_s1 + $0xd8] sm:$0xff]  ;;  %s260_s18 = scalar_lea.vmem %s2690_s5, %s1645_s15 }
  0x23   : > { %1722 = vmatprep.mubr.msk.f32.mxu0 %vm295_vm1, %v263_v7  ;;  %v289_v33 = vld [vmem:[%s2686_s1 + $0xe0] sm:$0xff]  ;;  %v290_v34 = vld [vmem:[%s2686_s1 + $0xe8] sm:$0xff]  ;;  %v291_v35 = vld [vmem:[%s2686_s1 + $0xf0] sm:$0xff] }
  0x24   : > { %v292_v36 = vld [vmem:[%s2686_s1 + $0xf8] sm:$0xff]  ;;  %v654_v38 = vld [vmem:[%s2687_s2 + $0x8] sm:$0xff] }
  0x25   : > { %781 = vmatprep.mubr.f32.mxu1 %v654_v38 }
  0x26   : > { %1723 = vmatmul.mubr.msk.f32.gmra.mrb[2].mxu0 %vm295_vm1, %v264_v8 }
  0x27   : > { %1725 = vmatprep.mubr.msk.f32.mxu0 %vm295_vm1, %v265_v9 }
  0x2a   : > { %1726 = vmatmul.mubr.msk.f32.gmra.mrb[4].mxu0 %vm295_vm1, %v266_v10 }
  0x2b   : > { %1728 = vmatprep.mubr.msk.f32.mxu0 %vm295_vm1, %v267_v11 }
  0x2e   : > { %1729 = vmatmul.mubr.msk.f32.gmra.mrb[6].mxu0 %vm295_vm1, %v268_v12 }
  0x2f   : > { %1731 = vmatprep.mubr.msk.f32.mxu0 %vm295_vm1, %v269_v13 }
  0x32   : > { %1732 = vmatmul.mubr.msk.f32.gmra.mrb[8].mxu0 %vm295_vm1, %v270_v14 }
  0x33   : > { %1734 = vmatprep.mubr.msk.f32.mxu0 %vm295_vm1, %v271_v15 }
  0x36   : > { %1735 = vmatmul.mubr.msk.f32.gmra.mrb[10].mxu0 %vm295_vm1, %v272_v16 }
  0x37   : > { %1737 = vmatprep.mubr.msk.f32.mxu0 %vm295_vm1, %v273_v17 }
  0x3a   : > { %1738 = vmatmul.mubr.msk.f32.gmra.mrb[12].mxu0 %vm295_vm1, %v274_v18 }
  0x3b   : > { %1740 = vmatprep.mubr.msk.f32.mxu0 %vm295_vm1, %v275_v19 }
  0x3e   : > { %1741 = vmatmul.mubr.msk.f32.gmra.mrb[14].mxu0 %vm295_vm1, %v276_v20 }
  0x3f   : > { %1743 = vmatprep.mubr.msk.f32.mxu0 %vm295_vm1, %v277_v21 }
  0x42   : > { %1744 = vmatmul.mubr.msk.f32.gmra.mrb[16].mxu0 %vm295_vm1, %v278_v22 }
  0x43   : > { %1746 = vmatprep.mubr.msk.f32.mxu0 %vm295_vm1, %v279_v23 }
  0x46   : > { %1747 = vmatmul.mubr.msk.f32.gmra.mrb[18].mxu0 %vm295_vm1, %v280_v24 }
  0x47   : > { %1749 = vmatprep.mubr.msk.f32.mxu0 %vm295_vm1, %v281_v25 }
  0x4a   : > { %1750 = vmatmul.mubr.msk.f32.gmra.mrb[20].mxu0 %vm295_vm1, %v282_v26 }
  0x4b   : > { %1752 = vmatprep.mubr.msk.f32.mxu0 %vm295_vm1, %v283_v27 }
  0x4e   : > { %1753 = vmatmul.mubr.msk.f32.gmra.mrb[22].mxu0 %vm295_vm1, %v284_v28 }
  0x4f   : > { %1755 = vmatprep.mubr.msk.f32.mxu0 %vm295_vm1, %v285_v29 }
  0x52   : > { %1756 = vmatmul.mubr.msk.f32.gmra.mrb[24].mxu0 %vm295_vm1, %v286_v30 }
  0x53   : > { %1758 = vmatprep.mubr.msk.f32.mxu0 %vm295_vm1, %v287_v31 }
  0x56   : > { %1759 = vmatmul.mubr.msk.f32.gmra.mrb[26].mxu0 %vm295_vm1, %v288_v32 }
  0x57   : > { %1761 = vmatprep.mubr.msk.f32.mxu0 %vm295_vm1, %v289_v33 }
  0x5a   : > { %1762 = vmatmul.mubr.msk.f32.gmra.mrb[28].mxu0 %vm295_vm1, %v290_v34 }
  0x5b   : > { %1764 = vmatprep.mubr.msk.f32.mxu0 %vm295_vm1, %v291_v35 }
  0x5e   : > { %1765 = vmatmul.mubr.msk.f32.gmra.mrb[30].mxu0 %vm295_vm1, %v292_v36 }
  0xf5   : > { %v1721_v39 = vpop.f32.mrb[0].mxu0 }
  0xf6   : > { %v622_v40 = vmax.f32 %v1721_v39, 0.0  ;;  %v462_v41 = vpop.f32.mrb[1].mxu0 }
  0xf7   : > { %v621_v42 = vmax.f32 %v462_v41, 0.0 }
  0xf9   : > { %v1724_v43 = vpop.f32.mrb[2].mxu0  ;;  %v1774_v44 = vpack.c.bf16 %v622_v40, %v621_v42 }
  0xfa   : > { %v624_v45 = vmax.f32 %v1724_v43, 0.0  ;;  %v472_v46 = vpop.f32.mrb[3].mxu0 }
  0xfb   : > { %v623_v47 = vmax.f32 %v472_v46, 0.0  ;;  %1775 = vmatpush1.bf16.msra.mxu1 %v1774_v44 }
  0xfc   : > { %1776 = vmatprep.subr.bf16.mxu1 %v1923_v37 }
  0xfd   : > { %v1777_v48 = vpack.c.bf16 %v624_v45, %v623_v47  ;;  %v1727_v49 = vpop.f32.mrb[4].mxu0 }
  0xfe   : > { %v626_v50 = vmax.f32 %v1727_v49, 0.0  ;;  %v482_v51 = vpop.f32.mrb[5].mxu0 }
  0xff   : > { %v625_v52 = vmax.f32 %v482_v51, 0.0  ;;  %1778 = vmatpush1.bf16.msra.mxu1 %v1777_v48 }
 0x100   : > { %1779 = vmatprep.subr.bf16.mxu1 %v1923_v37 }
 0x101   : > { %v1780_v53 = vpack.c.bf16 %v626_v50, %v625_v52  ;;  %v1730_v54 = vpop.f32.mrb[6].mxu0 }
 0x102   : > { %v628_v55 = vmax.f32 %v1730_v54, 0.0  ;;  %v492_v56 = vpop.f32.mrb[7].mxu0 }
 0x103   : > { %v627_v57 = vmax.f32 %v492_v56, 0.0  ;;  %1781 = vmatpush1.bf16.msra.mxu1 %v1780_v53  ;;  %v653_v56 = vld [vmem:[%s2687_s2] sm:$0xff] }
 0x104   : > { %1782 = vmatprep.subr.bf16.mxu1 %v1923_v37 }
 0x105   : > { %v1783_v58 = vpack.c.bf16 %v628_v55, %v627_v57  ;;  %v1733_v59 = vpop.f32.mrb[8].mxu0  ;;  %v656_v57 = vld [vmem:[%s2687_s2 + $0x18] sm:$0xff] }
 0x106   : > { %v630_v60 = vmax.f32 %v1733_v59, 0.0  ;;  %v502_v61 = vpop.f32.mrb[9].mxu0  ;;  %v658_v59 = vld [vmem:[%s2687_s2 + $0x28] sm:$0xff] }
 0x107   : > { %v629_v62 = vmax.f32 %v502_v61, 0.0  ;;  %1784 = vmatpush1.bf16.msra.mxu1 %v1783_v58  ;;  %v655_v58 = vld [vmem:[%s2687_s2 + $0x10] sm:$0xff]  ;;  %v660_v61 = vld [vmem:[%s2687_s2 + $0x38] sm:$0xff] }
 0x108   : > { %1785 = vmatprep.subr.bf16.mxu1 %v1923_v37 }
 0x109   : > { %v1786_v63 = vpack.c.bf16 %v630_v60, %v629_v62  ;;  %v1736_v0 = vpop.f32.mrb[10].mxu0  ;;  %v657_v60 = vld [vmem:[%s2687_s2 + $0x20] sm:$0xff]  ;;  %v659_v62 = vld [vmem:[%s2687_s2 + $0x30] sm:$0xff] }
 0x10a   : > { %v632_v1 = vmax.f32 %v1736_v0, 0.0  ;;  %v512_v2 = vpop.f32.mrb[11].mxu0  ;;  %v661_v0 = vld [vmem:[%s2687_s2 + $0x40] sm:$0xff] }
 0x10b   : > { %v631_v3 = vmax.f32 %v512_v2, 0.0  ;;  %1787 = vmatpush1.bf16.msra.mxu1 %v1786_v63  ;;  %v662_v63 = vld [vmem:[%s2687_s2 + $0x48] sm:$0xff]  ;;  %v663_v2 = vld [vmem:[%s2687_s2 + $0x50] sm:$0xff] }
 0x10c   : > { %1788 = vmatprep.subr.bf16.mxu1 %v1923_v37 }
 0x10d   : > { %v1789_v4 = vpack.c.bf16 %v632_v1, %v631_v3  ;;  %v1739_v5 = vpop.f32.mrb[12].mxu0  ;;  %v664_v1 = vld [vmem:[%s2687_s2 + $0x58] sm:$0xff]  ;;  %v666_v3 = vld [vmem:[%s2687_s2 + $0x68] sm:$0xff] }
 0x10e   : > { %v634_v6 = vmax.f32 %v1739_v5, 0.0  ;;  %v522_v7 = vpop.f32.mrb[13].mxu0  ;;  %v668_v5 = vld [vmem:[%s2687_s2 + $0x78] sm:$0xff] }
 0x10f   : > { %v633_v8 = vmax.f32 %v522_v7, 0.0  ;;  %1790 = vmatpush1.bf16.msra.mxu1 %v1789_v4  ;;  %v665_v4 = vld [vmem:[%s2687_s2 + $0x60] sm:$0xff]  ;;  %v670_v7 = vld [vmem:[%s2687_s2 + $0x88] sm:$0xff] }
 0x110   : > { %1791 = vmatprep.subr.bf16.mxu1 %v1923_v37 }
 0x111   : > { %v1792_v9 = vpack.c.bf16 %v634_v6, %v633_v8  ;;  %v1742_v10 = vpop.f32.mrb[14].mxu0  ;;  %v667_v6 = vld [vmem:[%s2687_s2 + $0x70] sm:$0xff]  ;;  %v669_v8 = vld [vmem:[%s2687_s2 + $0x80] sm:$0xff] }
 0x112   : > { %v636_v11 = vmax.f32 %v1742_v10, 0.0  ;;  %v532_v12 = vpop.f32.mrb[15].mxu0  ;;  %v671_v10 = vld [vmem:[%s2687_s2 + $0x90] sm:$0xff] }
 0x113   : > { %v635_v13 = vmax.f32 %v532_v12, 0.0  ;;  %1793 = vmatpush1.bf16.msra.mxu1 %v1792_v9  ;;  %v672_v9 = vld [vmem:[%s2687_s2 + $0x98] sm:$0xff]  ;;  %v673_v12 = vld [vmem:[%s2687_s2 + $0xa0] sm:$0xff] }
 0x114   : > { %1794 = vmatprep.subr.bf16.mxu1 %v1923_v37 }
 0x115   : > { %v1795_v14 = vpack.c.bf16 %v636_v11, %v635_v13  ;;  %v1745_v15 = vpop.f32.mrb[16].mxu0  ;;  %v674_v11 = vld [vmem:[%s2687_s2 + $0xa8] sm:$0xff]  ;;  %v676_v13 = vld [vmem:[%s2687_s2 + $0xb8] sm:$0xff] }
 0x116   : > { %v638_v16 = vmax.f32 %v1745_v15, 0.0  ;;  %v542_v17 = vpop.f32.mrb[17].mxu0  ;;  %v678_v15 = vld [vmem:[%s2687_s2 + $0xc8] sm:$0xff] }
 0x117   : > { %v637_v18 = vmax.f32 %v542_v17, 0.0  ;;  %1796 = vmatpush1.bf16.msra.mxu1 %v1795_v14  ;;  %v675_v14 = vld [vmem:[%s2687_s2 + $0xb0] sm:$0xff]  ;;  %v680_v17 = vld [vmem:[%s2687_s2 + $0xd8] sm:$0xff] }
 0x118   : > { %1797 = vmatprep.subr.bf16.mxu1 %v1923_v37 }
 0x119   : > { %v1798_v19 = vpack.c.bf16 %v638_v16, %v637_v18  ;;  %v1748_v20 = vpop.f32.mrb[18].mxu0  ;;  %v677_v16 = vld [vmem:[%s2687_s2 + $0xc0] sm:$0xff]  ;;  %v679_v18 = vld [vmem:[%s2687_s2 + $0xd0] sm:$0xff] }
 0x11a   : > { %v640_v21 = vmax.f32 %v1748_v20, 0.0  ;;  %v552_v22 = vpop.f32.mrb[19].mxu0  ;;  %v681_v20 = vld [vmem:[%s2687_s2 + $0xe0] sm:$0xff] }
 0x11b   : > { %v639_v23 = vmax.f32 %v552_v22, 0.0  ;;  %1799 = vmatpush1.bf16.msra.mxu1 %v1798_v19  ;;  %v682_v19 = vld [vmem:[%s2687_s2 + $0xe8] sm:$0xff]  ;;  %v683_v22 = vld [vmem:[%s2687_s2 + $0xf0] sm:$0xff] }
 0x11c   : > { %1800 = vmatprep.subr.bf16.mxu1 %v1923_v37 }
 0x11d   : > { %v1801_v24 = vpack.c.bf16 %v640_v21, %v639_v23  ;;  %v1751_v25 = vpop.f32.mrb[20].mxu0  ;;  %v684_v21 = vld [vmem:[%s2687_s2 + $0xf8] sm:$0xff]  ;;  %v686_v23 = vld [vmem:[%s2687_s2 + $0x108] sm:$0xff] }
 0x11e   : > { %v642_v26 = vmax.f32 %v1751_v25, 0.0  ;;  %v562_v27 = vpop.f32.mrb[21].mxu0  ;;  %v688_v25 = vld [vmem:[%s2687_s2 + $0x118] sm:$0xff] }
 0x11f   : > { %v641_v28 = vmax.f32 %v562_v27, 0.0  ;;  %1802 = vmatpush1.bf16.msra.mxu1 %v1801_v24  ;;  %v685_v24 = vld [vmem:[%s2687_s2 + $0x100] sm:$0xff]  ;;  %v690_v27 = vld [vmem:[%s2687_s2 + $0x128] sm:$0xff] }
 0x120   : > { %1803 = vmatprep.subr.bf16.mxu1 %v1923_v37 }
 0x121   : > { %v1804_v29 = vpack.c.bf16 %v642_v26, %v641_v28  ;;  %v1754_v30 = vpop.f32.mrb[22].mxu0  ;;  %v687_v26 = vld [vmem:[%s2687_s2 + $0x110] sm:$0xff]  ;;  %v689_v28 = vld [vmem:[%s2687_s2 + $0x120] sm:$0xff] }
 0x122   : > { %v644_v31 = vmax.f32 %v1754_v30, 0.0  ;;  %v572_v32 = vpop.f32.mrb[23].mxu0  ;;  %v691_v30 = vld [vmem:[%s2687_s2 + $0x130] sm:$0xff] }
 0x123   : > { %v643_v33 = vmax.f32 %v572_v32, 0.0  ;;  %1805 = vmatpush1.bf16.msra.mxu1 %v1804_v29  ;;  %v692_v29 = vld [vmem:[%s2687_s2 + $0x138] sm:$0xff]  ;;  %v693_v32 = vld [vmem:[%s2687_s2 + $0x140] sm:$0xff] }
 0x124   : > { %1806 = vmatprep.subr.bf16.mxu1 %v1923_v37 }
 0x125   : > { %v1807_v34 = vpack.c.bf16 %v644_v31, %v643_v33  ;;  %v1757_v35 = vpop.f32.mrb[24].mxu0  ;;  %v694_v31 = vld [vmem:[%s2687_s2 + $0x148] sm:$0xff]  ;;  %v696_v33 = vld [vmem:[%s2687_s2 + $0x158] sm:$0xff] }
 0x126   : > { %v646_v36 = vmax.f32 %v1757_v35, 0.0  ;;  %v582_v38 = vpop.f32.mrb[25].mxu0  ;;  %v698_v35 = vld [vmem:[%s2687_s2 + $0x168] sm:$0xff] }
 0x127   : > { %v645_v39 = vmax.f32 %v582_v38, 0.0  ;;  %1808 = vmatpush1.bf16.msra.mxu1 %v1807_v34  ;;  %v695_v34 = vld [vmem:[%s2687_s2 + $0x150] sm:$0xff]  ;;  %v700_v38 = vld [vmem:[%s2687_s2 + $0x178] sm:$0xff] }
 0x128   : > { %1809 = vmatprep.subr.bf16.mxu1 %v1923_v37 }
 0x129   : > { %v1810_v40 = vpack.c.bf16 %v646_v36, %v645_v39  ;;  %v1760_v41 = vpop.f32.mrb[26].mxu0  ;;  %v697_v36 = vld [vmem:[%s2687_s2 + $0x160] sm:$0xff]  ;;  %v699_v39 = vld [vmem:[%s2687_s2 + $0x170] sm:$0xff] }
 0x12a   : > { %v648_v42 = vmax.f32 %v1760_v41, 0.0  ;;  %v592_v43 = vpop.f32.mrb[27].mxu0  ;;  %v701_v41 = vld [vmem:[%s2687_s2 + $0x180] sm:$0xff] }
 0x12b   : > { %v647_v44 = vmax.f32 %v592_v43, 0.0  ;;  %1811 = vmatpush1.bf16.msra.mxu1 %v1810_v40  ;;  %v702_v40 = vld [vmem:[%s2687_s2 + $0x188] sm:$0xff]  ;;  %v703_v43 = vld [vmem:[%s2687_s2 + $0x190] sm:$0xff] }
 0x12c   : > { %1812 = vmatprep.subr.bf16.mxu1 %v1923_v37 }
 0x12d   : > { %v1813_v45 = vpack.c.bf16 %v648_v42, %v647_v44  ;;  %v1763_v46 = vpop.f32.mrb[28].mxu0  ;;  %v704_v42 = vld [vmem:[%s2687_s2 + $0x198] sm:$0xff]  ;;  %v706_v44 = vld [vmem:[%s2687_s2 + $0x1a8] sm:$0xff] }
 0x12e   : > { %v650_v47 = vmax.f32 %v1763_v46, 0.0  ;;  %v602_v48 = vpop.f32.mrb[29].mxu0  ;;  %v708_v46 = vld [vmem:[%s2687_s2 + $0x1b8] sm:$0xff] }
 0x12f   : > { %v649_v49 = vmax.f32 %v602_v48, 0.0  ;;  %1814 = vmatpush1.bf16.msra.mxu1 %v1813_v45  ;;  %v705_v45 = vld [vmem:[%s2687_s2 + $0x1a0] sm:$0xff]  ;;  %v710_v48 = vld [vmem:[%s2687_s2 + $0x1c8] sm:$0xff] }
 0x130   : > { %1815 = vmatprep.subr.bf16.mxu1 %v1923_v37 }
 0x131   : > { %v1816_v50 = vpack.c.bf16 %v650_v47, %v649_v49  ;;  %v1766_v51 = vpop.f32.mrb[30].mxu0  ;;  %v707_v47 = vld [vmem:[%s2687_s2 + $0x1b0] sm:$0xff]  ;;  %v709_v49 = vld [vmem:[%s2687_s2 + $0x1c0] sm:$0xff] }
 0x132   : > { %v652_v52 = vmax.f32 %v1766_v51, 0.0  ;;  %v612_v53 = vpop.f32.mrb[31].mxu0  ;;  %v711_v51 = vld [vmem:[%s2687_s2 + $0x1d0] sm:$0xff] }
 0x133   : > { %v651_v54 = vmax.f32 %v612_v53, 0.0  ;;  %1817 = vmatpush1.bf16.msra.mxu1 %v1816_v50  ;;  %v712_v50 = vld [vmem:[%s2687_s2 + $0x1d8] sm:$0xff]  ;;  %v713_v53 = vld [vmem:[%s2687_s2 + $0x1e0] sm:$0xff] }
 0x134   : > { %1818 = vmatprep.subr.bf16.mxu1 %v1923_v37 }
 0x135   : > { %v1819_v55 = vpack.c.bf16 %v652_v52, %v651_v54  ;;  %v714_v52 = vld [vmem:[%s2687_s2 + $0x1e8] sm:$0xff]  ;;  %v716_v54 = vld [vmem:[%s2687_s2 + $0x1f8] sm:$0xff] }
 0x137   : > { %1820 = vmatpush1.bf16.msra.mxu1 %v1819_v55  ;;  %v715_v55 = vld [vmem:[%s2687_s2 + $0x1f0] sm:$0xff] }
 0x13a   : > { %782 = vmatmul.mubr.f32.vlgmr.msra.gmra.mrb[0].mxu1 %v653_v56 }
 0x13b   : > { %786 = vmatprep.mubr.f32.mxu1 %v656_v57 }
 0x13e   : > { %787 = vmatmul.mubr.f32.gmra.mrb[2].mxu1 %v655_v58  ;;  %v975_v58 = vld [vmem:[%s2688_s3 + $0x8] sm:$0xff] }
 0x13f   : > { %791 = vmatprep.mubr.f32.mxu1 %v658_v59  ;;  %1102 = vmatprep.mubr.f32.mxu0 %v975_v58 }
 0x142   : > { %792 = vmatmul.mubr.f32.gmra.mrb[4].mxu1 %v657_v60 }
 0x143   : > { %796 = vmatprep.mubr.f32.mxu1 %v660_v61 }
 0x146   : > { %797 = vmatmul.mubr.f32.gmra.mrb[6].mxu1 %v659_v62 }
 0x147   : > { %801 = vmatprep.mubr.f32.mxu1 %v662_v63 }
 0x14a   : > { %802 = vmatmul.mubr.f32.gmra.mrb[8].mxu1 %v661_v0 }
 0x14b   : > { %806 = vmatprep.mubr.f32.mxu1 %v664_v1 }
 0x14e   : > { %807 = vmatmul.mubr.f32.gmra.mrb[10].mxu1 %v663_v2 }
 0x14f   : > { %811 = vmatprep.mubr.f32.mxu1 %v666_v3 }
 0x152   : > { %812 = vmatmul.mubr.f32.gmra.mrb[12].mxu1 %v665_v4 }
 0x153   : > { %816 = vmatprep.mubr.f32.mxu1 %v668_v5 }
 0x156   : > { %817 = vmatmul.mubr.f32.gmra.mrb[14].mxu1 %v667_v6 }
 0x157   : > { %821 = vmatprep.mubr.f32.mxu1 %v670_v7 }
 0x15a   : > { %822 = vmatmul.mubr.f32.gmra.mrb[16].mxu1 %v669_v8 }
 0x15b   : > { %826 = vmatprep.mubr.f32.mxu1 %v672_v9 }
 0x15e   : > { %827 = vmatmul.mubr.f32.gmra.mrb[18].mxu1 %v671_v10 }
 0x15f   : > { %831 = vmatprep.mubr.f32.mxu1 %v674_v11 }
 0x162   : > { %832 = vmatmul.mubr.f32.gmra.mrb[20].mxu1 %v673_v12 }
 0x163   : > { %836 = vmatprep.mubr.f32.mxu1 %v676_v13 }
 0x166   : > { %837 = vmatmul.mubr.f32.gmra.mrb[22].mxu1 %v675_v14 }
 0x167   : > { %841 = vmatprep.mubr.f32.mxu1 %v678_v15 }
 0x16a   : > { %842 = vmatmul.mubr.f32.gmra.mrb[24].mxu1 %v677_v16 }
 0x16b   : > { %846 = vmatprep.mubr.f32.mxu1 %v680_v17 }
 0x16e   : > { %847 = vmatmul.mubr.f32.gmra.mrb[26].mxu1 %v679_v18 }
 0x16f   : > { %851 = vmatprep.mubr.f32.mxu1 %v682_v19 }
 0x172   : > { %852 = vmatmul.mubr.f32.gmra.mrb[28].mxu1 %v681_v20 }
 0x173   : > { %856 = vmatprep.mubr.f32.mxu1 %v684_v21 }
 0x176   : > { %857 = vmatmul.mubr.f32.gmra.mrb[30].mxu1 %v683_v22 }
 0x177   : > { %861 = vmatprep.mubr.f32.mxu1 %v686_v23 }
 0x17a   : > { %862 = vmatmul.mubr.f32.gmra.mrb[32].mxu1 %v685_v24 }
 0x17b   : > { %866 = vmatprep.mubr.f32.mxu1 %v688_v25 }
 0x17e   : > { %867 = vmatmul.mubr.f32.gmra.mrb[34].mxu1 %v687_v26 }
 0x17f   : > { %871 = vmatprep.mubr.f32.mxu1 %v690_v27 }
 0x182   : > { %872 = vmatmul.mubr.f32.gmra.mrb[36].mxu1 %v689_v28 }
 0x183   : > { %876 = vmatprep.mubr.f32.mxu1 %v692_v29 }
 0x186   : > { %877 = vmatmul.mubr.f32.gmra.mrb[38].mxu1 %v691_v30 }
 0x187   : > { %881 = vmatprep.mubr.f32.mxu1 %v694_v31 }
 0x18a   : > { %882 = vmatmul.mubr.f32.gmra.mrb[40].mxu1 %v693_v32 }
 0x18b   : > { %886 = vmatprep.mubr.f32.mxu1 %v696_v33 }
 0x18e   : > { %887 = vmatmul.mubr.f32.gmra.mrb[42].mxu1 %v695_v34 }
 0x18f   : > { %891 = vmatprep.mubr.f32.mxu1 %v698_v35 }
 0x192   : > { %892 = vmatmul.mubr.f32.gmra.mrb[44].mxu1 %v697_v36 }
 0x193   : > { %896 = vmatprep.mubr.f32.mxu1 %v700_v38 }
 0x196   : > { %897 = vmatmul.mubr.f32.gmra.mrb[46].mxu1 %v699_v39 }
 0x197   : > { %901 = vmatprep.mubr.f32.mxu1 %v702_v40 }
 0x19a   : > { %902 = vmatmul.mubr.f32.gmra.mrb[48].mxu1 %v701_v41 }
 0x19b   : > { %906 = vmatprep.mubr.f32.mxu1 %v704_v42 }
 0x19e   : > { %907 = vmatmul.mubr.f32.gmra.mrb[50].mxu1 %v703_v43 }
 0x19f   : > { %911 = vmatprep.mubr.f32.mxu1 %v706_v44 }
 0x1a2   : > { %912 = vmatmul.mubr.f32.gmra.mrb[52].mxu1 %v705_v45 }
 0x1a3   : > { %916 = vmatprep.mubr.f32.mxu1 %v708_v46 }
 0x1a6   : > { %917 = vmatmul.mubr.f32.gmra.mrb[54].mxu1 %v707_v47 }
 0x1a7   : > { %921 = vmatprep.mubr.f32.mxu1 %v710_v48 }
 0x1aa   : > { %922 = vmatmul.mubr.f32.gmra.mrb[56].mxu1 %v709_v49 }
 0x1ab   : > { %926 = vmatprep.mubr.f32.mxu1 %v712_v50 }
 0x1ae   : > { %927 = vmatmul.mubr.f32.gmra.mrb[58].mxu1 %v711_v51 }
 0x1af   : > { %931 = vmatprep.mubr.f32.mxu1 %v714_v52 }
 0x1b2   : > { %932 = vmatmul.mubr.f32.gmra.mrb[60].mxu1 %v713_v53 }
 0x1b3   : > { %936 = vmatprep.mubr.f32.mxu1 %v716_v54 }
 0x1b6   : > { %937 = vmatmul.mubr.f32.gmra.mrb[62].mxu1 %v715_v55 }
 0x20d   : > { %v783_v56 = vpop.f32.mrb[0].mxu1 }
 0x20e   : > { %v785_v57 = vpop.f32.mrb[1].mxu1  ;;  %v942_v60 = vmax.f32 %v783_v56, 0.0 }
 0x211   : > { %v788_v59 = vpop.f32.mrb[2].mxu1 }
 0x212   : > { %v943_v61 = vmax.f32 %v788_v59, 0.0  ;;  %v790_v62 = vpop.f32.mrb[3].mxu1 }
 0x214   : > { %v1822_v63 = vpack.c.bf16 %v943_v61, %v942_v60 }
 0x215   : > { %v793_v0 = vpop.f32.mrb[4].mxu1 }
 0x216   : > { %v795_v1 = vpop.f32.mrb[5].mxu1  ;;  %1823 = vmatpush1.bf16.msra.mxu0 %v1822_v63  ;;  %v944_v3 = vmax.f32 %v793_v0, 0.0 }
 0x217   : > { %1824 = vmatprep.subr.bf16.mxu0 %v1923_v37 }
 0x219   : > { %v798_v2 = vpop.f32.mrb[6].mxu1 }
 0x21a   : > { %v945_v4 = vmax.f32 %v798_v2, 0.0  ;;  %v800_v5 = vpop.f32.mrb[7].mxu1 }
 0x21c   : > { %v1825_v6 = vpack.c.bf16 %v945_v4, %v944_v3 }
 0x21d   : > { %v803_v7 = vpop.f32.mrb[8].mxu1 }
 0x21e   : > { %v805_v8 = vpop.f32.mrb[9].mxu1  ;;  %1826 = vmatpush1.bf16.msra.mxu0 %v1825_v6  ;;  %v946_v10 = vmax.f32 %v803_v7, 0.0 }
 0x21f   : > { %1827 = vmatprep.subr.bf16.mxu0 %v1923_v37  ;;  %v1295_v8 = vld [vmem:[%s2689_s4] sm:$0xff] }
 0x221   : > { %v808_v9 = vpop.f32.mrb[10].mxu1 }
 0x222   : > { %v947_v11 = vmax.f32 %v808_v9, 0.0  ;;  %v810_v12 = vpop.f32.mrb[11].mxu1 }
 0x223   : > { %v1296_v12 = vld [vmem:[%s2689_s4 + $0x8] sm:$0xff] }
 0x224   : > { %v1828_v13 = vpack.c.bf16 %v947_v11, %v946_v10  ;;  %v1924_v10 = vmov 0  }
 0x225   : > { %v813_v14 = vpop.f32.mrb[12].mxu1  ;;  %1896 = vset.pattern.permute.xlu0 %v1924_v10  ;;  %1897 = vset.pattern.permute.xlu1 %v1924_v10  ;;  %v1309_v10 = vld [vmem:[%s2689_s4 + $0x70] sm:$0xff] }
 0x226   : > { %v815_v15 = vpop.f32.mrb[13].mxu1  ;;  %1829 = vmatpush1.bf16.msra.mxu0 %v1828_v13  ;;  %v948_v17 = vmax.f32 %v813_v14, 0.0  ;;  %1329 = vperm.xlu0 %1896, %v1295_v8   ;;  %v1297_v13 = vld [vmem:[%s2689_s4 + $0x10] sm:$0xff]  ;;  %v981_v8 = vld [vmem:[%s2688_s3 + $0x38] sm:$0xff] }
 0x227   : > { %1830 = vmatprep.subr.bf16.mxu0 %v1923_v37  ;;  %1339 = vperm.xlu1 %1897, %v1297_v13   ;;  %v1324_v13 = vld [vmem:[%s2689_s4 + $0xe8] sm:$0xff] }
 0x229   : > { %v818_v16 = vpop.f32.mrb[14].mxu1 }
 0x22a   : > { %v949_v18 = vmax.f32 %v818_v16, 0.0  ;;  %v820_v19 = vpop.f32.mrb[15].mxu1  ;;  %1334 = vperm.xlu0 %1896, %v1296_v12   ;;  %v983_v12 = vld [vmem:[%s2688_s3 + $0x48] sm:$0xff] }
 0x22b   : > { %v1298_v19 = vld [vmem:[%s2689_s4 + $0x18] sm:$0xff] }
 0x22c   : > { %v1831_v20 = vpack.c.bf16 %v949_v18, %v948_v17  ;;  %1344 = vperm.xlu1 %1897, %v1298_v19   ;;  %v984_v19 = vld [vmem:[%s2688_s3 + $0x50] sm:$0xff] }
 0x22d   : > { %v823_v21 = vpop.f32.mrb[16].mxu1 }
 0x22e   : > { %v825_v22 = vpop.f32.mrb[17].mxu1  ;;  %1832 = vmatpush1.bf16.msra.mxu0 %v1831_v20  ;;  %v950_v24 = vmax.f32 %v823_v21, 0.0 }
 0x22f   : > { %1833 = vmatprep.subr.bf16.mxu0 %v1923_v37  ;;  %v1299_v22 = vld [vmem:[%s2689_s4 + $0x20] sm:$0xff] }
 0x230   : > { %1349 = vperm.xlu0 %1896, %v1299_v22   ;;  %v1326_v22 = vld [vmem:[%s2689_s4 + $0xf8] sm:$0xff] }
 0x231   : > { %v828_v23 = vpop.f32.mrb[18].mxu1 }
 0x232   : > { %v951_v25 = vmax.f32 %v828_v23, 0.0  ;;  %v830_v26 = vpop.f32.mrb[19].mxu1  ;;  %v1300_v23 = vld [vmem:[%s2689_s4 + $0x28] sm:$0xff] }
 0x233   : > { %1354 = vperm.xlu1 %1897, %v1300_v23   ;;  %v986_v23 = vld [vmem:[%s2688_s3 + $0x60] sm:$0xff] }
 0x234   : > { %v1834_v27 = vpack.c.bf16 %v951_v25, %v950_v24 }
 0x235   : > { %v833_v28 = vpop.f32.mrb[20].mxu1 }
 0x236   : > { %v835_v29 = vpop.f32.mrb[21].mxu1  ;;  %1835 = vmatpush1.bf16.msra.mxu0 %v1834_v27  ;;  %v952_v31 = vmax.f32 %v833_v28, 0.0 }
 0x237   : > { %1836 = vmatprep.subr.bf16.mxu0 %v1923_v37  ;;  %v1301_v29 = vld [vmem:[%s2689_s4 + $0x30] sm:$0xff] }
 0x238   : > { %1359 = vperm.xlu0 %1896, %v1301_v29   ;;  %v992_v29 = vld [vmem:[%s2688_s3 + $0x90] sm:$0xff] }
 0x239   : > { %v838_v30 = vpop.f32.mrb[22].mxu1 }
 0x23a   : > { %v953_v32 = vmax.f32 %v838_v30, 0.0  ;;  %v840_v33 = vpop.f32.mrb[23].mxu1  ;;  %v1302_v30 = vld [vmem:[%s2689_s4 + $0x38] sm:$0xff] }
 0x23b   : > { %1364 = vperm.xlu1 %1897, %v1302_v30   ;;  %v1303_v33 = vld [vmem:[%s2689_s4 + $0x40] sm:$0xff]  ;;  %v995_v30 = vld [vmem:[%s2688_s3 + $0xa8] sm:$0xff] }
 0x23c   : > { %v1837_v34 = vpack.c.bf16 %v953_v32, %v952_v31  ;;  %1369 = vperm.xlu0 %1896, %v1303_v33   ;;  %v996_v33 = vld [vmem:[%s2688_s3 + $0xb0] sm:$0xff] }
 0x23d   : > { %v843_v35 = vpop.f32.mrb[24].mxu1 }
 0x23e   : > { %v845_v36 = vpop.f32.mrb[25].mxu1  ;;  %1838 = vmatpush1.bf16.msra.mxu0 %v1837_v34  ;;  %v954_v39 = vmax.f32 %v843_v35, 0.0  ;;  %v1304_v34 = vld [vmem:[%s2689_s4 + $0x48] sm:$0xff] }
 0x23f   : > { %1839 = vmatprep.subr.bf16.mxu0 %v1923_v37  ;;  %1374 = vperm.xlu1 %1897, %v1304_v34   ;;  %v999_v34 = vld [vmem:[%s2688_s3 + $0xc8] sm:$0xff] }
 0x241   : > { %v848_v38 = vpop.f32.mrb[26].mxu1 }
 0x242   : > { %v955_v40 = vmax.f32 %v848_v38, 0.0  ;;  %v850_v41 = vpop.f32.mrb[27].mxu1 }
 0x243   : > { %v1311_v41 = vld [vmem:[%s2689_s4 + $0x80] sm:$0xff] }
 0x244   : > { %v1840_v42 = vpack.c.bf16 %v955_v40, %v954_v39  ;;  %1409 = vperm.xlu0 %1896, %v1311_v41   ;;  %v1005_v41 = vld [vmem:[%s2688_s3 + $0xf8] sm:$0xff] }
 0x245   : > { %v853_v43 = vpop.f32.mrb[28].mxu1 }
 0x246   : > { %v855_v44 = vpop.f32.mrb[29].mxu1  ;;  %1841 = vmatpush1.bf16.msra.mxu0 %v1840_v42  ;;  %v956_v46 = vmax.f32 %v853_v43, 0.0  ;;  %v1312_v42 = vld [vmem:[%s2689_s4 + $0x88] sm:$0xff] }
 0x247   : > { %1842 = vmatprep.subr.bf16.mxu0 %v1923_v37  ;;  %1414 = vperm.xlu1 %1897, %v1312_v42   ;;  %v1004_v42 = vld [vmem:[%s2688_s3 + $0xf0] sm:$0xff] }
 0x249   : > { %v858_v45 = vpop.f32.mrb[30].mxu1 }
 0x24a   : > { %v957_v47 = vmax.f32 %v858_v45, 0.0  ;;  %v860_v48 = vpop.f32.mrb[31].mxu1  ;;  %v1305_v45 = vld [vmem:[%s2689_s4 + $0x50] sm:$0xff] }
 0x24b   : > { %1379 = vperm.xlu0 %1896, %v1305_v45   ;;  %v1009_v45 = vld [vmem:[%s2688_s3 + $0x118] sm:$0xff] }
 0x24c   : > { %v1843_v49 = vpack.c.bf16 %v957_v47, %v956_v46  ;;  %v1319_v46 = vld [vmem:[%s2689_s4 + $0xc0] sm:$0xff] }
 0x24d   : > { %v863_v50 = vpop.f32.mrb[32].mxu1  ;;  %1449 = vperm.xlu1 %1897, %v1319_v46   ;;  %v1008_v46 = vld [vmem:[%s2688_s3 + $0x110] sm:$0xff] }
 0x24e   : > { %v865_v51 = vpop.f32.mrb[33].mxu1  ;;  %1844 = vmatpush1.bf16.msra.mxu0 %v1843_v49  ;;  %v958_v53 = vmax.f32 %v863_v50, 0.0 }
 0x24f   : > { %1845 = vmatprep.subr.bf16.mxu0 %v1923_v37 }
 0x251   : > { %v868_v52 = vpop.f32.mrb[34].mxu1 }
 0x252   : > { %v959_v54 = vmax.f32 %v868_v52, 0.0  ;;  %v870_v55 = vpop.f32.mrb[35].mxu1  ;;  %v1320_v52 = vld [vmem:[%s2689_s4 + $0xc8] sm:$0xff] }
 0x253   : > { %1454 = vperm.xlu0 %1896, %v1320_v52   ;;  %v1014_v52 = vld [vmem:[%s2688_s3 + $0x140] sm:$0xff] }
 0x254   : > { %v1846_v56 = vpack.c.bf16 %v959_v54, %v958_v53  ;;  %v1313_v53 = vld [vmem:[%s2689_s4 + $0x90] sm:$0xff] }
 0x255   : > { %v873_v57 = vpop.f32.mrb[36].mxu1  ;;  %1419 = vperm.xlu1 %1897, %v1313_v53   ;;  %v1017_v53 = vld [vmem:[%s2688_s3 + $0x158] sm:$0xff] }
 0x256   : > { %v875_v58 = vpop.f32.mrb[37].mxu1  ;;  %1847 = vmatpush1.bf16.msra.mxu0 %v1846_v56  ;;  %v960_v60 = vmax.f32 %v873_v57, 0.0  ;;  %v1306_v56 = vld [vmem:[%s2689_s4 + $0x58] sm:$0xff]  ;;  %v1321_v57 = vld [vmem:[%s2689_s4 + $0xd0] sm:$0xff] }
 0x257   : > { %1848 = vmatprep.subr.bf16.mxu0 %v1923_v37  ;;  %1384 = vperm.xlu0 %1896, %v1306_v56   ;;  %v1018_v56 = vld [vmem:[%s2688_s3 + $0x160] sm:$0xff] }
 0x259   : > { %v878_v59 = vpop.f32.mrb[38].mxu1  ;;  %1459 = vperm.xlu1 %1897, %v1321_v57   ;;  %v1021_v57 = vld [vmem:[%s2688_s3 + $0x178] sm:$0xff] }
 0x25a   : > { %v961_v61 = vmax.f32 %v878_v59, 0.0  ;;  %v880_v62 = vpop.f32.mrb[39].mxu1 }
 0x25b   : > { %v1307_v62 = vld [vmem:[%s2689_s4 + $0x60] sm:$0xff] }
 0x25c   : > { %v1849_v63 = vpack.c.bf16 %v961_v61, %v960_v60 }
 0x25d   : > { %v883_v0 = vpop.f32.mrb[40].mxu1  ;;  %1389 = vperm.xlu1 %1897, %v1307_v62   ;;  %v1027_v62 = vld [vmem:[%s2688_s3 + $0x1a8] sm:$0xff] }
 0x25e   : > { %v885_v1 = vpop.f32.mrb[41].mxu1  ;;  %1850 = vmatpush1.bf16.msra.mxu0 %v1849_v63  ;;  %v962_v3 = vmax.f32 %v883_v0, 0.0  ;;  %v974_v63 = vld [vmem:[%s2688_s3] sm:$0xff]  ;;  %v977_v0 = vld [vmem:[%s2688_s3 + $0x18] sm:$0xff] }
 0x25f   : > { %1851 = vmatprep.subr.bf16.mxu0 %v1923_v37  ;;  %v1322_v1 = vld [vmem:[%s2689_s4 + $0xd8] sm:$0xff] }
 0x261   : > { %v888_v2 = vpop.f32.mrb[42].mxu1 }
 0x262   : > { %v963_v4 = vmax.f32 %v888_v2, 0.0  ;;  %v890_v5 = vpop.f32.mrb[43].mxu1  ;;  %v1315_v2 = vld [vmem:[%s2689_s4 + $0xa0] sm:$0xff] }
 0x263   : > { %1429 = vperm.xlu1 %1897, %v1315_v2   ;;  %v1308_v5 = vld [vmem:[%s2689_s4 + $0x68] sm:$0xff] }
 0x264   : > { %v1852_v6 = vpack.c.bf16 %v963_v4, %v962_v3  ;;  %v976_v3 = vld [vmem:[%s2688_s3 + $0x10] sm:$0xff]  ;;  %v979_v4 = vld [vmem:[%s2688_s3 + $0x28] sm:$0xff] }
 0x265   : > { %v893_v7 = vpop.f32.mrb[44].mxu1  ;;  %v1031_v2 = vld [vmem:[%s2688_s3 + $0x1c8] sm:$0xff] }
 0x266   : > { %v895_v9 = vpop.f32.mrb[45].mxu1  ;;  %1853 = vmatpush1.bf16.msra.mxu0 %v1852_v6  ;;  %v964_v14 = vmax.f32 %v893_v7, 0.0  ;;  %v1323_v6 = vld [vmem:[%s2689_s4 + $0xe0] sm:$0xff] }
 0x267   : > { %1854 = vmatprep.subr.bf16.mxu0 %v1923_v37  ;;  %v978_v7 = vld [vmem:[%s2688_s3 + $0x20] sm:$0xff]  ;;  %1469 = vperm.xlu1 %1897, %v1323_v6   ;;  %v1316_v9 = vld [vmem:[%s2689_s4 + $0xa8] sm:$0xff] }
 0x268   : > { %v1035_v6 = vld [vmem:[%s2688_s3 + $0x1e8] sm:$0xff] }
 0x269   : > { %v898_v11 = vpop.f32.mrb[46].mxu1 }
 0x26a   : > { %v965_v15 = vmax.f32 %v898_v11, 0.0  ;;  %v900_v16 = vpop.f32.mrb[47].mxu1  ;;  %v980_v11 = vld [vmem:[%s2688_s3 + $0x30] sm:$0xff] }
 0x26b   : > { %1399 = vperm.xlu1 %1897, %v1309_v10   ;;  %v985_v16 = vld [vmem:[%s2688_s3 + $0x58] sm:$0xff] }
 0x26c   : > { %v1855_v17 = vpack.c.bf16 %v965_v15, %v964_v14  ;;  %v1317_v14 = vld [vmem:[%s2689_s4 + $0xb0] sm:$0xff]  ;;  %v982_v15 = vld [vmem:[%s2688_s3 + $0x40] sm:$0xff] }
 0x26d   : > { %v903_v18 = vpop.f32.mrb[48].mxu1 }
 0x26e   : > { %v905_v20 = vpop.f32.mrb[49].mxu1  ;;  %1856 = vmatpush1.bf16.msra.mxu0 %v1855_v17  ;;  %v966_v24 = vmax.f32 %v903_v18, 0.0  ;;  %v1310_v17 = vld [vmem:[%s2689_s4 + $0x78] sm:$0xff]  ;;  %v1325_v18 = vld [vmem:[%s2689_s4 + $0xf0] sm:$0xff] }
 0x26f   : > { %1857 = vmatprep.subr.bf16.mxu0 %v1923_v37  ;;  %1439 = vperm.xlu1 %1897, %v1317_v14   ;;  %v987_v20 = vld [vmem:[%s2688_s3 + $0x68] sm:$0xff] }
 0x271   : > { %v908_v21 = vpop.f32.mrb[50].mxu1 }
 0x272   : > { %v967_v25 = vmax.f32 %v908_v21, 0.0  ;;  %v910_v26 = vpop.f32.mrb[51].mxu1  ;;  %v1318_v21 = vld [vmem:[%s2689_s4 + $0xb8] sm:$0xff] }
 0x273   : > { %1479 = vperm.xlu1 %1897, %v1325_v18   ;;  %v991_v26 = vld [vmem:[%s2688_s3 + $0x88] sm:$0xff] }
 0x274   : > { %v1858_v27 = vpack.c.bf16 %v967_v25, %v966_v24  ;;  %v989_v24 = vld [vmem:[%s2688_s3 + $0x78] sm:$0xff]  ;;  %v988_v25 = vld [vmem:[%s2688_s3 + $0x70] sm:$0xff] }
 0x275   : > { %v913_v28 = vpop.f32.mrb[52].mxu1 }
 0x276   : > { %v915_v31 = vpop.f32.mrb[53].mxu1  ;;  %1859 = vmatpush1.bf16.msra.mxu0 %v1858_v27  ;;  %v968_v35 = vmax.f32 %v913_v28, 0.0  ;;  %v990_v27 = vld [vmem:[%s2688_s3 + $0x80] sm:$0xff]  ;;  %v993_v28 = vld [vmem:[%s2688_s3 + $0x98] sm:$0xff] }
 0x277   : > { %1860 = vmatprep.subr.bf16.mxu0 %v1923_v37  ;;  %1484 = vperm.xlu1 %1897, %v1326_v22   ;;  %v994_v31 = vld [vmem:[%s2688_s3 + $0xa0] sm:$0xff] }
 0x279   : > { %v918_v32 = vpop.f32.mrb[54].mxu1 }
 0x27a   : > { %v969_v36 = vmax.f32 %v918_v32, 0.0  ;;  %v920_v38 = vpop.f32.mrb[55].mxu1  ;;  %v997_v32 = vld [vmem:[%s2688_s3 + $0xb8] sm:$0xff] }
 0x27b   : > { %v1000_v38 = vld [vmem:[%s2688_s3 + $0xd0] sm:$0xff] }
 0x27c   : > { %v1861_v39 = vpack.c.bf16 %v969_v36, %v968_v35  ;;  %v998_v35 = vld [vmem:[%s2688_s3 + $0xc0] sm:$0xff]  ;;  %v1001_v36 = vld [vmem:[%s2688_s3 + $0xd8] sm:$0xff] }
 0x27d   : > { %v923_v40 = vpop.f32.mrb[56].mxu1 }
 0x27e   : > { %v925_v43 = vpop.f32.mrb[57].mxu1  ;;  %1862 = vmatpush1.bf16.msra.mxu0 %v1861_v39  ;;  %v970_v47 = vmax.f32 %v923_v40, 0.0  ;;  %v1003_v39 = vld [vmem:[%s2688_s3 + $0xe8] sm:$0xff]  ;;  %v1002_v40 = vld [vmem:[%s2688_s3 + $0xe0] sm:$0xff] }
 0x27f   : > { %1863 = vmatprep.subr.bf16.mxu0 %v1923_v37  ;;  %v1007_v43 = vld [vmem:[%s2688_s3 + $0x108] sm:$0xff] }
 0x281   : > { %v928_v44 = vpop.f32.mrb[58].mxu1 }
 0x282   : > { %v971_v48 = vmax.f32 %v928_v44, 0.0  ;;  %v930_v49 = vpop.f32.mrb[59].mxu1  ;;  %v1006_v44 = vld [vmem:[%s2688_s3 + $0x100] sm:$0xff] }
 0x283   : > { %v1013_v49 = vld [vmem:[%s2688_s3 + $0x138] sm:$0xff] }
 0x284   : > { %v1864_v50 = vpack.c.bf16 %v971_v48, %v970_v47  ;;  %v1011_v47 = vld [vmem:[%s2688_s3 + $0x128] sm:$0xff]  ;;  %v1010_v48 = vld [vmem:[%s2688_s3 + $0x120] sm:$0xff] }
 0x285   : > { %v933_v51 = vpop.f32.mrb[60].mxu1 }
 0x286   : > { %v935_v54 = vpop.f32.mrb[61].mxu1  ;;  %1865 = vmatpush1.bf16.msra.mxu0 %v1864_v50  ;;  %v972_v58 = vmax.f32 %v933_v51, 0.0  ;;  %v1012_v50 = vld [vmem:[%s2688_s3 + $0x130] sm:$0xff]  ;;  %v1015_v51 = vld [vmem:[%s2688_s3 + $0x148] sm:$0xff] }
 0x287   : > { %1866 = vmatprep.subr.bf16.mxu0 %v1923_v37  ;;  %v1314_v37 = vld [vmem:[%s2689_s4 + $0x98] sm:$0xff]  ;;  %v1016_v54 = vld [vmem:[%s2688_s3 + $0x150] sm:$0xff] }
 0x288   : > { %1424 = vperm.xlu0 %1896, %v1314_v37   ;;  %v1024_v37 = vld [vmem:[%s2688_s3 + $0x190] sm:$0xff] }
 0x289   : > { %v938_v55 = vpop.f32.mrb[62].mxu1 }
 0x28a   : > { %v973_v59 = vmax.f32 %v938_v55, 0.0  ;;  %v940_v60 = vpop.f32.mrb[63].mxu1  ;;  %v1019_v55 = vld [vmem:[%s2688_s3 + $0x168] sm:$0xff] }
 0x28b   : > { %v1022_v60 = vld [vmem:[%s2688_s3 + $0x180] sm:$0xff] }
 0x28c   : > { %v1867_v61 = vpack.c.bf16 %v973_v59, %v972_v58  ;;  %1464 = vperm.xlu0 %1896, %v1322_v1   ;;  %v1020_v58 = vld [vmem:[%s2688_s3 + $0x170] sm:$0xff]  ;;  %v1023_v59 = vld [vmem:[%s2688_s3 + $0x188] sm:$0xff] }
 0x28d   : > { %v1028_v1 = vld [vmem:[%s2688_s3 + $0x1b0] sm:$0xff] }
 0x28e   : > { %1868 = vmatpush1.bf16.msra.mxu0 %v1867_v61  ;;  %v1025_v61 = vld [vmem:[%s2688_s3 + $0x198] sm:$0xff] }
 0x290   : > { %1394 = vperm.xlu0 %1896, %v1308_v5   ;;  %v1032_v5 = vld [vmem:[%s2688_s3 + $0x1d0] sm:$0xff] }
 0x291   : > { %1103 = vmatmul.mubr.f32.vlgmr.msra.gmra.mrb[32].mxu0 %v974_v63  ;;  %v1026_v63 = vld [vmem:[%s2688_s3 + $0x1a0] sm:$0xff] }
 0x292   : > { %1107 = vmatprep.mubr.f32.mxu0 %v977_v0  ;;  %v1029_v0 = vld [vmem:[%s2688_s3 + $0x1b8] sm:$0xff] }
 0x294   : > { %1434 = vperm.xlu0 %1896, %v1316_v9   ;;  %v1036_v9 = vld [vmem:[%s2688_s3 + $0x1f0] sm:$0xff] }
 0x295   : > { %1108 = vmatmul.mubr.f32.gmra.mrb[34].mxu0 %v976_v3  ;;  %v1030_v3 = vld [vmem:[%s2688_s3 + $0x1c0] sm:$0xff] }
 0x296   : > { %1112 = vmatprep.mubr.f32.mxu0 %v979_v4  ;;  %v1033_v4 = vld [vmem:[%s2688_s3 + $0x1d8] sm:$0xff] }
 0x298   : > { %1474 = vperm.xlu0 %1896, %v1324_v13  }
 0x299   : > { %1113 = vmatmul.mubr.f32.gmra.mrb[36].mxu0 %v978_v7  ;;  %v1034_v7 = vld [vmem:[%s2688_s3 + $0x1e0] sm:$0xff] }
 0x29a   : > { %1117 = vmatprep.mubr.f32.mxu0 %v981_v8  ;;  %v1037_v8 = vld [vmem:[%s2688_s3 + $0x1f8] sm:$0xff] }
 0x29c   : > { %1404 = vperm.xlu0 %1896, %v1310_v17  }
 0x29d   : > { %1118 = vmatmul.mubr.f32.gmra.mrb[38].mxu0 %v980_v11 }
 0x29e   : > { %1122 = vmatprep.mubr.f32.mxu0 %v983_v12 }
 0x2a0   : > { %1444 = vperm.xlu0 %1896, %v1318_v21  }
 0x2a1   : > { %1123 = vmatmul.mubr.f32.gmra.mrb[40].mxu0 %v982_v15 }
 0x2a2   : > { %1127 = vmatprep.mubr.f32.mxu0 %v985_v16 }
 0x2a5   : > { %1128 = vmatmul.mubr.f32.gmra.mrb[42].mxu0 %v984_v19  ;;  %v1330_v10 = vpop.permute.xlu0 %1329 }
 0x2a6   : > { %1132 = vmatprep.mubr.f32.mxu0 %v987_v20  ;;  %v1340_v12 = vpop.permute.xlu1 %1339 }
 0x2a9   : > { %1133 = vmatmul.mubr.f32.gmra.mrb[44].mxu0 %v986_v23  ;;  %v1335_v11 = vpop.permute.xlu0 %1334 }
 0x2aa   : > { %1137 = vmatprep.mubr.f32.mxu0 %v989_v24 }
 0x2ab   : > { %v1345_v14 = vpop.permute.xlu1 %1344 }
 0x2ad   : > { %1138 = vmatmul.mubr.f32.gmra.mrb[46].mxu0 %v988_v25 }
 0x2ae   : > { %1142 = vmatprep.mubr.f32.mxu0 %v991_v26 }
 0x2af   : > { %v1350_v13 = vpop.permute.xlu0 %1349 }
 0x2b1   : > { %1143 = vmatmul.mubr.f32.gmra.mrb[48].mxu0 %v990_v27 }
 0x2b2   : > { %1147 = vmatprep.mubr.f32.mxu0 %v993_v28  ;;  %v1355_v16 = vpop.permute.xlu1 %1354 }
 0x2b5   : > { %1148 = vmatmul.mubr.f32.gmra.mrb[50].mxu0 %v992_v29 }
 0x2b6   : > { %1152 = vmatprep.mubr.f32.mxu0 %v995_v30 }
 0x2b7   : > { %v1360_v15 = vpop.permute.xlu0 %1359 }
 0x2b9   : > { %1153 = vmatmul.mubr.f32.gmra.mrb[52].mxu0 %v994_v31 }
 0x2ba   : > { %1157 = vmatprep.mubr.f32.mxu0 %v997_v32  ;;  %v1365_v22 = vpop.permute.xlu1 %1364 }
 0x2bb   : > { %v1370_v18 = vpop.permute.xlu0 %1369 }
 0x2bd   : > { %1158 = vmatmul.mubr.f32.gmra.mrb[54].mxu0 %v996_v33 }
 0x2be   : > { %1162 = vmatprep.mubr.f32.mxu0 %v999_v34  ;;  %v1375_v32 = vpop.permute.xlu1 %1374 }
 0x2c1   : > { %1163 = vmatmul.mubr.f32.gmra.mrb[56].mxu0 %v998_v35 }
 0x2c2   : > { %1167 = vmatprep.mubr.f32.mxu0 %v1001_v36 }
 0x2c3   : > { %v2632_v25 = vpop.permute.xlu0 %1409 }
 0x2c5   : > { %1168 = vmatmul.mubr.f32.gmra.mrb[58].mxu0 %v1000_v38 }
 0x2c6   : > { %1172 = vmatprep.mubr.f32.mxu0 %v1003_v39 }
 0x2c9   : > { %1173 = vmatmul.mubr.f32.gmra.mrb[60].mxu0 %v1002_v40 }
 0x2ca   : > { %1177 = vmatprep.mubr.f32.mxu0 %v1005_v41  ;;  %v1380_v35 = vpop.permute.xlu0 %1379 }
 0x2cd   : > { %1178 = vmatmul.mubr.f32.gmra.mrb[62].mxu0 %v1004_v42  ;;  %v2634_v42 = vpop.permute.xlu1 %1414 }
 0x2ce   : > { %1182 = vmatprep.mubr.f32.mxu0 %v1007_v43 }
 0x2d1   : > { %1183 = vmatmul.mubr.f32.gmra.mrb[64].mxu0 %v1006_v44 }
 0x2d2   : > { %1187 = vmatprep.mubr.f32.mxu0 %v1009_v45 }
 0x2d5   : > { %1188 = vmatmul.mubr.f32.gmra.mrb[66].mxu0 %v1008_v46  ;;  %v2636_v46 = vpop.permute.xlu0 %1454 }
 0x2d6   : > { %1192 = vmatprep.mubr.f32.mxu0 %v1011_v47 }
 0x2d9   : > { %1193 = vmatmul.mubr.f32.gmra.mrb[68].mxu0 %v1010_v48 }
 0x2da   : > { %1197 = vmatprep.mubr.f32.mxu0 %v1013_v49 }
 0x2dd   : > { %1198 = vmatmul.mubr.f32.gmra.mrb[70].mxu0 %v1012_v50 }
 0x2de   : > { %1202 = vmatprep.mubr.f32.mxu0 %v1015_v51 }
 0x2e1   : > { %1203 = vmatmul.mubr.f32.gmra.mrb[72].mxu0 %v1014_v52  ;;  %v2638_v52 = vpop.permute.xlu1 %1449 }
 0x2e2   : > { %1207 = vmatprep.mubr.f32.mxu0 %v1017_v53 }
 0x2e5   : > { %1208 = vmatmul.mubr.f32.gmra.mrb[74].mxu0 %v1016_v54 }
 0x2e6   : > { %1212 = vmatprep.mubr.f32.mxu0 %v1019_v55  ;;  %v1385_v55 = vpop.permute.xlu0 %1384 }
 0x2e9   : > { %1213 = vmatmul.mubr.f32.gmra.mrb[76].mxu0 %v1018_v56 }
 0x2ea   : > { %1217 = vmatprep.mubr.f32.mxu0 %v1021_v57 }
 0x2ed   : > { %1218 = vmatmul.mubr.f32.gmra.mrb[78].mxu0 %v1020_v58 }
 0x2ee   : > { %1222 = vmatprep.mubr.f32.mxu0 %v1023_v59 }
 0x2f1   : > { %1223 = vmatmul.mubr.f32.gmra.mrb[80].mxu0 %v1022_v60 }
 0x2f2   : > { %1227 = vmatprep.mubr.f32.mxu0 %v1025_v61  ;;  %v2640_v61 = vpop.permute.xlu1 %1419 }
 0x2f5   : > { %1228 = vmatmul.mubr.f32.gmra.mrb[82].mxu0 %v1024_v37 }
 0x2f6   : > { %1232 = vmatprep.mubr.f32.mxu0 %v1027_v62 }
 0x2f9   : > { %1233 = vmatmul.mubr.f32.gmra.mrb[84].mxu0 %v1026_v63 }
 0x2fa   : > { %1237 = vmatprep.mubr.f32.mxu0 %v1029_v0 }
 0x2fd   : > { %1238 = vmatmul.mubr.f32.gmra.mrb[86].mxu0 %v1028_v1 }
 0x2fe   : > { %1242 = vmatprep.mubr.f32.mxu0 %v1031_v2 }
 0x301   : > { %1243 = vmatmul.mubr.f32.gmra.mrb[88].mxu0 %v1030_v3 }
 0x302   : > { %1247 = vmatprep.mubr.f32.mxu0 %v1033_v4 }
 0x305   : > { %1248 = vmatmul.mubr.f32.gmra.mrb[90].mxu0 %v1032_v5  ;;  %v2644_v5 = vpop.permute.xlu1 %1459 }
 0x306   : > { %1252 = vmatprep.mubr.f32.mxu0 %v1035_v6 }
 0x307   : > { %v2642_v0 = vpop.permute.xlu0 %1424 }
 0x309   : > { %1253 = vmatmul.mubr.f32.gmra.mrb[92].mxu0 %v1034_v7 }
 0x30a   : > { %1257 = vmatprep.mubr.f32.mxu0 %v1037_v8 }
 0x30b   : > { %v2646_v8 = vpop.permute.xlu0 %1464 }
 0x30d   : > { %1258 = vmatmul.mubr.f32.gmra.mrb[94].mxu0 %v1036_v9 }
 0x364   : > { %v1104_v17 = vpop.f32.mrb[32].mxu0 }
 0x365   : > { %v1106_v19 = vpop.f32.mrb[33].mxu0  ;;  %v1263_v20 = vmax.f32 %v1104_v17, 0.0 }
 0x366   : > { %v1395_v19 = vpop.permute.xlu0 %1394 }
 0x367   : > { %v1487_v26 = vmul.f32 %v1330_v10, %v1263_v20 }
 0x368   : > { %v1109_v21 = vpop.f32.mrb[34].mxu0 }
 0x369   : > { %v1264_v23 = vmax.f32 %v1109_v21, 0.0  ;;  %v1111_v24 = vpop.f32.mrb[35].mxu0 }
 0x36b   : > { %v1488_v27 = vmul.f32 %v1335_v11, %v1264_v23 }
 0x36c   : > { %v1114_v28 = vpop.f32.mrb[36].mxu0 }
 0x36d   : > { %v1519_v29 = vadd.f32 %v1488_v27, %v1487_v26  ;;  %v1265_v30 = vmax.f32 %v1114_v28, 0.0  ;;  %v1116_v31 = vpop.f32.mrb[37].mxu0 }
 0x36f   : > { %v1489_v33 = vmul.f32 %v1340_v12, %v1265_v30 }
 0x370   : > { %v1119_v34 = vpop.f32.mrb[38].mxu0 }
 0x371   : > { %v1520_v36 = vadd.f32 %v1519_v29, %v1489_v33  ;;  %v1266_v38 = vmax.f32 %v1119_v34, 0.0  ;;  %v1121_v39 = vpop.f32.mrb[39].mxu0  ;;  %v2650_v29 = vpop.permute.xlu0 %1434 }
 0x373   : > { %v1490_v40 = vmul.f32 %v1345_v14, %v1266_v38  ;;  %v1390_v14 = vpop.permute.xlu1 %1389 }
 0x374   : > { %v1124_v41 = vpop.f32.mrb[40].mxu0 }
 0x375   : > { %v1521_v43 = vadd.f32 %v1520_v36, %v1490_v40  ;;  %v1267_v44 = vmax.f32 %v1124_v41, 0.0  ;;  %v1126_v45 = vpop.f32.mrb[41].mxu0  ;;  %v2654_v39 = vpop.permute.xlu0 %1474 }
 0x377   : > { %v1491_v47 = vmul.f32 %v1350_v13, %v1267_v44  ;;  %v2648_v26 = vpop.permute.xlu1 %1429 }
 0x378   : > { %v1129_v48 = vpop.f32.mrb[42].mxu0 }
 0x379   : > { %v1522_v49 = vadd.f32 %v1521_v43, %v1491_v47  ;;  %v1268_v50 = vmax.f32 %v1129_v48, 0.0  ;;  %v1131_v51 = vpop.f32.mrb[43].mxu0 }
 0x37a   : > { %v1405_v51 = vpop.permute.xlu0 %1404 }
 0x37b   : > { %v1492_v53 = vmul.f32 %v1355_v16, %v1268_v50  ;;  %v2652_v33 = vpop.permute.xlu1 %1469 }
 0x37c   : > { %v1134_v54 = vpop.f32.mrb[44].mxu0 }
 0x37d   : > { %v1523_v56 = vadd.f32 %v1522_v49, %v1492_v53  ;;  %v1269_v57 = vmax.f32 %v1134_v54, 0.0  ;;  %v1136_v58 = vpop.f32.mrb[45].mxu0 }
 0x37f   : > { %v1493_v59 = vmul.f32 %v1360_v15, %v1269_v57  ;;  %v1400_v48 = vpop.permute.xlu1 %1399 }
 0x380   : > { %v1139_v60 = vpop.f32.mrb[46].mxu0 }
 0x381   : > { %v1524_v37 = vadd.f32 %v1523_v56, %v1493_v59  ;;  %v1270_v62 = vmax.f32 %v1139_v60, 0.0  ;;  %v1141_v63 = vpop.f32.mrb[47].mxu0 }
 0x383   : > { %v1494_v1 = vmul.f32 %v1365_v22, %v1270_v62 }
 0x384   : > { %v1144_v2 = vpop.f32.mrb[48].mxu0 }
 0x385   : > { %v1525_v3 = vadd.f32 %v1524_v37, %v1494_v1  ;;  %v1146_v4 = vpop.f32.mrb[49].mxu0  ;;  %v1271_v6 = vmax.f32 %v1144_v2, 0.0 }
 0x387   : > { %v1495_v11 = vmul.f32 %v1370_v18, %v1271_v6  ;;  %v1526_v43 = vrot.slane %v1525_v3, 4 }
 0x388   : > { %v1149_v7 = vpop.f32.mrb[50].mxu0 }
 0x389   : > { %v1272_v9 = vmax.f32 %v1149_v7, 0.0  ;;  %v1151_v10 = vpop.f32.mrb[51].mxu0  ;;  %v1527_v53 = vadd.f32 %v1526_v43, %v1525_v3 }
 0x38b   : > { %v1496_v12 = vmul.f32 %v1375_v32, %v1272_v9  ;;  %v1528_v59 = vrot.slane %v1527_v53, 2 }
 0x38c   : > { %v1154_v13 = vpop.f32.mrb[52].mxu0 }
 0x38d   : > { %v1532_v15 = vadd.f32 %v1496_v12, %v1495_v11  ;;  %v1273_v16 = vmax.f32 %v1154_v13, 0.0  ;;  %v1156_v17 = vpop.f32.mrb[53].mxu0  ;;  %v1529_v2 = vadd.f32 %v1528_v59, %v1527_v53 }
 0x38f   : > { %v1497_v20 = vmul.f32 %v1380_v35, %v1273_v16  ;;  %v1530_v12 = vrot.slane %v1529_v2, 1 }
 0x390   : > { %v1159_v21 = vpop.f32.mrb[54].mxu0 }
 0x391   : > { %v1533_v22 = vadd.f32 %v1532_v15, %v1497_v20  ;;  %v1274_v23 = vmax.f32 %v1159_v21, 0.0  ;;  %v1161_v24 = vpop.f32.mrb[55].mxu0  ;;  %v1531_v21 = vadd.f32 %v1530_v12, %v1529_v2 }
 0x393   : > { %v1498_v27 = vmul.f32 %v1385_v55, %v1274_v23 }
 0x394   : > { %v1164_v28 = vpop.f32.mrb[56].mxu0 }
 0x395   : > { %v1534_v30 = vadd.f32 %v1533_v22, %v1498_v27  ;;  %v1275_v18 = vmax.f32 %v1164_v28, 0.0  ;;  %v1166_v31 = vpop.f32.mrb[57].mxu0 }
 0x397   : > { %v1499_v32 = vmul.f32 %v1390_v14, %v1275_v18 }
 0x398   : > { %v1169_v34 = vpop.f32.mrb[58].mxu0 }
 0x399   : > { %v1535_v36 = vadd.f32 %v1534_v30, %v1499_v32  ;;  %v1276_v38 = vmax.f32 %v1169_v34, 0.0  ;;  %v1171_v35 = vpop.f32.mrb[59].mxu0 }
 0x39b   : > { %v1500_v40 = vmul.f32 %v1395_v19, %v1276_v38 }
 0x39c   : > { %v1174_v41 = vpop.f32.mrb[60].mxu0 }
 0x39d   : > { %v1536_v44 = vadd.f32 %v1535_v36, %v1500_v40  ;;  %v1277_v45 = vmax.f32 %v1174_v41, 0.0  ;;  %v1176_v47 = vpop.f32.mrb[61].mxu0 }
 0x39f   : > { %v1501_v49 = vmul.f32 %v1400_v48, %v1277_v45  ;;  %v1440_v45 = vpop.permute.xlu1 %1439 }
 0x3a0   : > { %v1179_v50 = vpop.f32.mrb[62].mxu0 }
 0x3a1   : > { %v1278_v54 = vmax.f32 %v1179_v50, 0.0  ;;  %v1181_v55 = vpop.f32.mrb[63].mxu0  ;;  %v1537_v56 = vadd.f32 %v1536_v44, %v1501_v49 }
 0x3a3   : > { %v1502_v57 = vmul.f32 %v1405_v51, %v1278_v54  ;;  %v1445_v51 = vpop.permute.xlu0 %1444 }
 0x3a4   : > { %v1184_v58 = vpop.f32.mrb[64].mxu0 }
 0x3a5   : > { %v1538_v60 = vadd.f32 %v1537_v56, %v1502_v57  ;;  %v1186_v37 = vpop.f32.mrb[65].mxu0  ;;  %v1279_v63 = vmax.f32 %v1184_v58, 0.0 }
 0x3a7   : > { %v1539_v62 = vrot.slane %v1538_v60, 4  ;;  %v1503_v10 = vmul.f32 %v2632_v25, %v1279_v63 }
 0x3a8   : > { %v1189_v1 = vpop.f32.mrb[66].mxu0 }
 0x3a9   : > { %v1540_v4 = vadd.f32 %v1539_v62, %v1538_v60  ;;  %v1280_v6 = vmax.f32 %v1189_v1, 0.0  ;;  %v1191_v7 = vpop.f32.mrb[67].mxu0 }
 0x3ab   : > { %v1541_v9 = vrot.slane %v1540_v4, 2  ;;  %v1504_v3 = vmul.f32 %v2634_v42, %v1280_v6 }
 0x3ac   : > { %v1194_v11 = vpop.f32.mrb[68].mxu0 }
 0x3ad   : > { %v1542_v13 = vadd.f32 %v1541_v9, %v1540_v4  ;;  %v1545_v14 = vadd.f32 %v1504_v3, %v1503_v10  ;;  %v1281_v15 = vmax.f32 %v1194_v11, 0.0  ;;  %v1196_v16 = vpop.f32.mrb[69].mxu0 }
 0x3af   : > { %v1543_v17 = vrot.slane %v1542_v13, 1  ;;  %v1505_v19 = vmul.f32 %v2640_v61, %v1281_v15 }
 0x3b0   : > { %v1199_v20 = vpop.f32.mrb[70].mxu0 }
 0x3b1   : > { %v1544_v22 = vadd.f32 %v1543_v17, %v1542_v13  ;;  %v1546_v23 = vadd.f32 %v1545_v14, %v1505_v19  ;;  %v1282_v24 = vmax.f32 %v1199_v20, 0.0  ;;  %v1201_v27 = vpop.f32.mrb[71].mxu0 }
 0x3b2   : > { %v1480_v27 = vpop.permute.xlu1 %1479 }
 0x3b3   : > { %v1572_v28 = vsel %vm1571_vm4, %v1531_v21, %v1544_v22  ;;  %v1506_v25 = vmul.f32 %v2642_v0, %v1282_v24 }
 0x3b4   : > { %v1204_v42 = vpop.f32.mrb[72].mxu0 }
 0x3b5   : > { %v1547_v30 = vadd.f32 %v1546_v23, %v1506_v25  ;;  %v1283_v18 = vmax.f32 %v1204_v42, 0.0  ;;  %v1206_v31 = vpop.f32.mrb[73].mxu0 }
 0x3b7   : > { %v1507_v32 = vmul.f32 %v2648_v26, %v1283_v18 }
 0x3b8   : > { %v1209_v34 = vpop.f32.mrb[74].mxu0 }
 0x3b9   : > { %v1548_v36 = vadd.f32 %v1547_v30, %v1507_v32  ;;  %v1284_v38 = vmax.f32 %v1209_v34, 0.0  ;;  %v1211_v61 = vpop.f32.mrb[75].mxu0 }
 0x3bb   : > { %v1508_v35 = vmul.f32 %v2650_v29, %v1284_v38 }
 0x3bc   : > { %v1214_v40 = vpop.f32.mrb[76].mxu0 }
 0x3bd   : > { %v1549_v41 = vadd.f32 %v1548_v36, %v1508_v35  ;;  %v1285_v43 = vmax.f32 %v1214_v40, 0.0  ;;  %v1216_v44 = vpop.f32.mrb[77].mxu0  ;;  %v1485_v36 = vpop.permute.xlu1 %1484 }
 0x3bf   : > { %v1509_v47 = vmul.f32 %v1440_v45, %v1285_v43 }
 0x3c0   : > { %v1219_v48 = vpop.f32.mrb[78].mxu0 }
 0x3c1   : > { %v1550_v0 = vadd.f32 %v1549_v41, %v1509_v47  ;;  %v1286_v49 = vmax.f32 %v1219_v48, 0.0  ;;  %v1221_v50 = vpop.f32.mrb[79].mxu0 }
 0x3c3   : > { %v1510_v53 = vmul.f32 %v1445_v51, %v1286_v49 }
 0x3c4   : > { %v1224_v54 = vpop.f32.mrb[80].mxu0 }
 0x3c5   : > { %v1551_v26 = vadd.f32 %v1550_v0, %v1510_v53  ;;  %v1226_v55 = vpop.f32.mrb[81].mxu0  ;;  %v1287_v57 = vmax.f32 %v1224_v54, 0.0 }
 0x3c7   : > { %v1552_v56 = vrot.slane %v1551_v26, 4  ;;  %v1511_v62 = vmul.f32 %v2638_v52, %v1287_v57 }
 0x3c8   : > { %v1229_v58 = vpop.f32.mrb[82].mxu0 }
 0x3c9   : > { %v1553_v59 = vadd.f32 %v1552_v56, %v1551_v26  ;;  %v1288_v29 = vmax.f32 %v1229_v58, 0.0  ;;  %v1231_v60 = vpop.f32.mrb[83].mxu0 }
 0x3cb   : > { %v1554_v37 = vrot.slane %v1553_v59, 2  ;;  %v1512_v63 = vmul.f32 %v2636_v46, %v1288_v29 }
 0x3cc   : > { %v1234_v1 = vpop.f32.mrb[84].mxu0 }
 0x3cd   : > { %v1555_v2 = vadd.f32 %v1554_v37, %v1553_v59  ;;  %v1558_v4 = vadd.f32 %v1512_v63, %v1511_v62  ;;  %v1289_v6 = vmax.f32 %v1234_v1, 0.0  ;;  %v1236_v7 = vpop.f32.mrb[85].mxu0 }
 0x3cf   : > { %v1556_v9 = vrot.slane %v1555_v2, 1  ;;  %v1513_v10 = vmul.f32 %v2644_v5, %v1289_v6 }
 0x3d0   : > { %v1239_v3 = vpop.f32.mrb[86].mxu0 }
 0x3d1   : > { %v1557_v11 = vadd.f32 %v1556_v9, %v1555_v2  ;;  %v1559_v12 = vadd.f32 %v1558_v4, %v1513_v10  ;;  %v1290_v13 = vmax.f32 %v1239_v3, 0.0  ;;  %v1241_v14 = vpop.f32.mrb[87].mxu0 }
 0x3d3   : > { %v1574_v15 = vsel %vm1573_vm5, %v1572_v28, %v1557_v11  ;;  %v1514_v16 = vmul.f32 %v2646_v8, %v1290_v13 }
 0x3d4   : > { %v1244_v52 = vpop.f32.mrb[88].mxu0 }
 0x3d5   : > { %v1560_v17 = vadd.f32 %v1559_v12, %v1514_v16  ;;  %v1291_v46 = vmax.f32 %v1244_v52, 0.0  ;;  %v1246_v19 = vpop.f32.mrb[89].mxu0 }
 0x3d7   : > { %v1515_v20 = vmul.f32 %v2652_v33, %v1291_v46 }
 0x3d8   : > { %v1249_v21 = vpop.f32.mrb[90].mxu0 }
 0x3d9   : > { %v1561_v22 = vadd.f32 %v1560_v17, %v1515_v20  ;;  %v1292_v23 = vmax.f32 %v1249_v21, 0.0  ;;  %v1251_v5 = vpop.f32.mrb[91].mxu0 }
 0x3db   : > { %v1516_v24 = vmul.f32 %v2654_v39, %v1292_v23 }
 0x3dc   : > { %v1254_v25 = vpop.f32.mrb[92].mxu0 }
 0x3dd   : > { %v1562_v42 = vadd.f32 %v1561_v22, %v1516_v24  ;;  %v1293_v28 = vmax.f32 %v1254_v25, 0.0  ;;  %v1256_v30 = vpop.f32.mrb[93].mxu0 }
 0x3df   : > { %v1517_v8 = vmul.f32 %v1480_v27, %v1293_v28 }
 0x3e0   : > { %v1259_v18 = vpop.f32.mrb[94].mxu0 }
 0x3e1   : > { %v1563_v31 = vadd.f32 %v1562_v42, %v1517_v8  ;;  %v1294_v32 = vmax.f32 %v1259_v18, 0.0  ;;  %v1261_v34 = vpop.f32.mrb[95].mxu0 }
 0x3e3   : > { %v1518_v33 = vmul.f32 %v1485_v36, %v1294_v32 }
 0x3e5   : > { %v1564_v38 = vadd.f32 %v1563_v31, %v1518_v33 }
 0x3e7   : > { %v1565_v61 = vrot.slane %v1564_v38, 4 }
 0x3e9   : > { %v1566_v35 = vadd.f32 %v1565_v61, %v1564_v38 }
 0x3eb   : > { %v1567_v39 = vrot.slane %v1566_v35, 2 }
 0x3ed   : > { %v1568_v40 = vadd.f32 %v1567_v39, %v1566_v35 }
 0x3ef   : > { %v1569_v41 = vrot.slane %v1568_v40, 1 }
 0x3f1   : > { %v1570_v43 = vadd.f32 %v1569_v41, %v1568_v40 }
 0x3f3   : > { %v1576_v44 = vsel %vm1575_vm6, %v1574_v15, %v1570_v43 }
 0x3f4   : > { %1577 = vst [vmem:[%s260_s18] sm:$0xf] %v1576_v44 }
 0x3f5 PF: > { %p12_p9 = scmp.ge.s32.totalorder %s1972_s22, 4   ;;  %s2691_s18 = smov %s1916_s19 }
 0x3f6   : > { %s2692_s19 = smov %s1981_s25  ;;  %s2693_s20 = smov %s1972_s22 }
 0x3f7   :  { %14 = sbr.rel (!%p12_p9) target bundleno = 2 (0x2), region = 113 }

</bundles_post_ra>
